<compile_context>
chip_gen: v7x
topology: tpu7x:2x2x1
jax: 0.10.0
libtpu: 0.0.40
codegen_flags: <defaults>
</compile_context>

<pallas_src>
from functools import partial

import jax
import jax.numpy as jnp
import numpy as np
from jax.experimental import pallas as pl
from jax.experimental.pallas import tpu as pltpu

_LANE = 128                      # TPU lane width: channel dims are padded to this
_BLOCK_BUDGET = 8 << 20          # target bytes for (double-buffered) per-step blocks
_VMEM_LIMIT = 48 << 20           # headroom inside v7x's 64 MiB VMEM (v5e/v6e: 128 MiB)


def _round_up(x, m):
    return (x + m - 1) // m * m


# --------------------------------------------------------------------------- #
# kernel                                                                       #
# --------------------------------------------------------------------------- #
def _conv_lead_kernel(k, pad, stack_taps, x_ref, w_ref, o_ref):
    """Conv along the leading axis of a channels-last block.

    x_ref : (S_in,  R, Cin)   R = sublane-aligned tile of the non-conv axis
    w_ref : (k*Cin, Cout) if stack_taps else (k, Cin, Cout)
    o_ref : (S_out, R, Cout)
    out[s] = sum_t x_z[s + t - pad] @ w[t]     (x_z reads 0 outside [0, S_in))
    """
    s_in, r, cin = x_ref.shape
    s_out, _, cout = o_ref.shape
    x = x_ref[...]

    def tap(t):
        # Zero-padded shifted slice of x for tap t, shape (S_out, R, Cin).
        # Slices are along the block's MAJOR axis -> no sublane relayouts.
        d = t - pad
        lo = max(0, -d)                  # first output row this tap can touch
        hi = min(s_out, s_in - d)        # one past the last
        if hi <= lo:
            return jnp.zeros((s_out, r, cin), x.dtype)
        parts = []
        if lo > 0:
            parts.append(jnp.zeros((lo, r, cin), x.dtype))
        parts.append(x[lo + d:hi + d])
        if hi < s_out:
            parts.append(jnp.zeros((s_out - hi, r, cin), x.dtype))
        return parts[0] if len(parts) == 1 else jnp.concatenate(parts, axis=0)

    if stack_taps:
        # Small-Cin path: one deep (S_out*R, k*Cin) @ (k*Cin, Cout) contraction.
        # Cin is a multiple of 128 so the lane-dim concatenation is vreg-aligned.
        xs = jnp.concatenate([tap(t) for t in range(k)], axis=-1)
        acc = jnp.dot(xs.reshape(s_out * r, k * cin), w_ref[...],
                      preferred_element_type=jnp.float32)
    else:
        # Large-Cin path: k full-depth matmuls accumulated in f32.
        acc = jnp.zeros((s_out * r, cout), jnp.float32)
        for t in range(k):
            acc = acc + jnp.dot(tap(t).reshape(s_out * r, cin), w_ref[t],
                                preferred_element_type=jnp.float32)

    o_ref[...] = acc.reshape(s_out, r, cout).astype(o_ref.dtype)


# --------------------------------------------------------------------------- #
# pallas_call wrapper                                                          #
# --------------------------------------------------------------------------- #
def _pick_block_r(r_pad, s_in, s_out, cin, cout, in_dtype, out_dtype, stacked_k, sub):
    """Largest sublane-aligned R tile whose working set fits the VMEM budget."""
    in_b = s_in * cin * jnp.dtype(in_dtype).itemsize
    out_b = s_out * cout * jnp.dtype(out_dtype).itemsize
    acc_b = s_out * cout * 4                                     # f32 accumulator
    stk_b = s_out * stacked_k * cin * jnp.dtype(in_dtype).itemsize
    per_r = 2 * (in_b + out_b) + acc_b + stk_b                   # 2x: double buffering
    cap = _BLOCK_BUDGET // max(per_r, 1)
    cap = max(sub, min(512, int(cap) // sub * sub))
    return int(min(cap, r_pad))


def conv_lead(x, w, *, pad, out_dtype=None, stack_taps=None, block_r=None,
              input_buffers=None):
    """1-D cross-correlation along axis 1 of a channels-last tensor.

    x : (N, S_in, R, Cin)   Cin a multiple of 128 (lane-dense)
    w : (k, Cin, Cout)      tap-major, Cout a multiple of 128
    out[n, s, r, o] = sum_{t,c} x_zero[n, s + t - pad, r, c] * w[t, c, o]
    returns (N, S_out, R, Cout) with S_out = S_in + 2*pad - k + 1.
    """
    n, s_in, r_dim, cin = x.shape
    k, wcin, cout = w.shape
    assert wcin == cin and cin % _LANE == 0 and cout % _LANE == 0
    s_out = s_in + 2 * pad - k + 1
    assert s_out >= 1
    out_dtype = out_dtype or x.dtype

    if stack_taps is None:
        stack_taps = k * cin <= 1024      # fuse taps when the contraction is shallow
    w_arg = w.reshape(k * cin, cout) if stack_taps else w
    w_idx = (0,) * w_arg.ndim

    # sublane granularity of the second-minor block dim (8 f32 / 16 bf16 / 32 int8)
    sub = max(8, 32 // jnp.dtype(x.dtype).itemsize)
    r_pad = _round_up(r_dim, sub)
    if r_pad != r_dim:
        x = jnp.pad(x, ((0, 0), (0, 0), (0, r_pad - r_dim), (0, 0)))

    if block_r is None:
        block_r = _pick_block_r(r_pad, s_in, s_out, cin, cout, x.dtype, out_dtype,
                                k if stack_taps else 0, sub)

    x_block = (pl.Squeezed(), s_in, block_r, cin)
    x_map = lambda i, j: (i, 0, j, 0)
    if input_buffers is None:
        x_spec = pl.BlockSpec(x_block, x_map)
    else:
        # e.g. 3-deep input buffering on v5e if the input DMA is still exposed
        x_spec = pl.BlockSpec(x_block, x_map, pipeline_mode=pl.Buffered(input_buffers))

    out = pl.pallas_call(
        partial(_conv_lead_kernel, k, pad, stack_taps),
        out_shape=jax.ShapeDtypeStruct((n, s_out, r_pad, cout), out_dtype),
        grid=(n, pl.cdiv(r_pad, block_r)),
        in_specs=[
            x_spec,
            pl.BlockSpec(w_arg.shape, lambda i, j: w_idx),   # weights stay resident
        ],
        out_specs=pl.BlockSpec((pl.Squeezed(), s_out, block_r, cout),
                               lambda i, j: (i, 0, j, 0)),
        compiler_params=pltpu.CompilerParams(
            # both grid axes independent -> v7x can shard spatial tiles over 2 TCs
            dimension_semantics=("parallel", "parallel"),
            vmem_limit_bytes=_VMEM_LIMIT),
    )(x, w_arg)

    return out[:, :, :r_dim, :] if r_pad != r_dim else out


# --------------------------------------------------------------------------- #
# GCM forward                                                                  #
# --------------------------------------------------------------------------- #
def _prep_w(w_oik, cin_pad, cout_pad, dtype):
    """PyTorch (O, I, k) weight slice -> tap-major (k, I_pad, O_pad), zero-padded
    so both channel dims are lane-dense."""
    o, i, _ = w_oik.shape
    wt = jnp.transpose(w_oik, (2, 1, 0)).astype(dtype)
    return jnp.pad(wt, ((0, 0), (0, cin_pad - i), (0, cout_pad - o)))


def init_gcm_params(key, in_ch, out_ch, k):
    """PyTorch Conv2d default init: U(-1/sqrt(fan_in), 1/sqrt(fan_in))."""
    ks = jax.random.split(key, 4)

    def u(kk, shape):
        fan_in = shape[1] * shape[2] * shape[3]
        b = 1.0 / np.sqrt(fan_in)
        return jax.random.uniform(kk, shape, jnp.float32, -b, b)

    w_l1 = u(ks[0], (out_ch, in_ch, k, 1))   # conv_l1
    w_l2 = u(ks[1], (out_ch, out_ch, 1, k))  # conv_l2
    w_r1 = u(ks[2], (out_ch, in_ch, 1, k))   # conv_r1
    w_r2 = u(ks[3], (out_ch, out_ch, k, 1))  # conv_r2
    return w_l1, w_l2, w_r1, w_r2


def gcm_forward_pallas(x_nchw, params, k, *, compute_dtype=None, stack_taps=None):
    """GCM forward: conv_l2(conv_l1(x)) + conv_r2(conv_r1(x)) (exact module semantics)."""
    w_l1, w_l2, w_r1, w_r2 = params
    assert k % 2 == 1, "GCM needs odd k for the l and r branches to have equal shapes"
    p = k // 2
    n, cin, h, w = x_nchw.shape
    assert w > 2 * p, "width must exceed k-1 (valid conv inside the right branch)"
    cout = w_l1.shape[0]
    cdt = x_nchw.dtype if compute_dtype is None else jnp.dtype(compute_dtype)
    cin_p = _round_up(cin, _LANE)
    cout_p = _round_up(cout, _LANE)

    # (O, I, kh, kw) -> tap-major (k, I_pad, O_pad), lane-dense channel dims.
    wl1 = _prep_w(w_l1[:, :, :, 0], cin_p, cout_p, cdt)    # (k,1) kernel: conv along H
    wl2 = _prep_w(w_l2[:, :, 0, :], cout_p, cout_p, cdt)   # (1,k) kernel: conv along W
    wr1 = _prep_w(w_r1[:, :, 0, :], cin_p, cout_p, cdt)    # (1,k) kernel: conv along W
    wr2 = _prep_w(w_r2[:, :, :, 0], cout_p, cout_p, cdt)   # (k,1) kernel: conv along H

    xc = x_nchw.astype(cdt)
    chan_pad = ((0, 0), (0, 0), (0, 0), (0, cin_p - cin))
    # Channels-last, conv axis leading; 128-lane channel padding costs no extra HBM
    # bytes (a 4-wide minor dim is lane-padded in the physical layout anyway).
    x_hw = jnp.pad(jnp.transpose(xc, (0, 2, 3, 1)), chan_pad)   # (N, H, W, Cip)
    x_wh = jnp.pad(jnp.transpose(xc, (0, 3, 2, 1)), chan_pad)   # (N, W, H, Cip)

    # ---- left branch: same-pad conv along H, then same-pad conv along W -------
    l1 = conv_lead(x_hw, wl1, pad=p, stack_taps=stack_taps)                 # (N,H,W,Cop)
    l_wh = conv_lead(jnp.transpose(l1, (0, 2, 1, 3)), wl2, pad=p,
                     stack_taps=stack_taps)                                 # (N,W,H,Cop)
    l_hw = jnp.transpose(l_wh, (0, 2, 1, 3))                                # (N,H,W,Cop)

    # ---- right branch (the module's swapped paddings) -------------------------
    # conv_r1 pads H but its kernel is (1,k): it VALID-convolves along W and its
    # H-padding only adds zero rows.  conv_r2 pads W but its kernel is (k,1): the
    # zero rows make it a SAME conv along H, and its W-padding means the first and
    # last p output columns are exactly zero.  Hence
    #   r = same-H-conv(valid-W-conv(x)) placed in columns [p, W-p), zero elsewhere
    # and no zero padding is ever materialised in HBM.
    r1_wh = conv_lead(x_wh, wr1, pad=0, stack_taps=stack_taps)              # (N,W-2p,H,Cop)
    r1_hw = jnp.transpose(r1_wh, (0, 2, 1, 3))                              # (N,H,W-2p,Cop)
    r_mid = conv_lead(r1_hw, wr2, pad=p, stack_taps=stack_taps)             # (N,H,W-2p,Cop)

    # TODO(synk): fuse each conv pair into one pallas_call (intermediate kept in
    # VMEM, H<->W reorientation in-kernel) to remove these XLA transpose passes.
    out = l_hw.astype(jnp.float32)
    out = out.at[:, :, p:w - p, :].add(r_mid.astype(jnp.float32))           # l + r
    out = out[..., :cout]                                                   # drop lane pad
    return jnp.transpose(out, (0, 3, 1, 2)).astype(x_nchw.dtype)            # NHWC -> NCHW


# --------------------------------------------------------------------------- #
# pure-JAX reference (exact PyTorch Conv2d semantics)                          #
# --------------------------------------------------------------------------- #
def gcm_forward_reference(x_nchw, params, k):
    w_l1, w_l2, w_r1, w_r2 = params
    p = k // 2

    def conv(x, w, pad):
        return jax.lax.conv_general_dilated(
            x, w, window_strides=(1, 1),
            padding=((pad[0], pad[0]), (pad[1], pad[1])),
            dimension_numbers=("NCHW", "OIHW", "NCHW"),
            precision=jax.lax.Precision.HIGHEST)

    l = conv(x_nchw, w_l1, (p, 0))
    l = conv(l, w_l2, (0, p))
    r = conv(x_nchw, w_r1, (p, 0))
    r = conv(r, w_r2, (0, p))
    return l + r


if __name__ == "__main__":
    key = jax.random.PRNGKey(0)
    kx, kp = jax.random.split(key)

    N, CIN, H, W = 2, 4, 16, 16
    COUT, K = 4, 7  # k must be odd (required by the PyTorch module for l + r)

    x = jax.random.normal(kx, (N, CIN, H, W), jnp.float32)
    params = init_gcm_params(kp, CIN, COUT, K)

    ref = jax.block_until_ready(gcm_forward_reference(x, params, K))

    # f32 compute, fused-tap (stacked) matmul path.
    fwd = jax.jit(partial(gcm_forward_pallas, k=K))
    out = jax.block_until_ready(fwd(x, params))
    assert out.shape == (N, COUT, H, W), out.shape
    np.testing.assert_allclose(np.asarray(out), np.asarray(ref), rtol=1e-2, atol=1e-2)

    # bf16 activations/weights (f32 MXU accumulation), per-tap matmul path.
    fwd_bf16 = jax.jit(partial(gcm_forward_pallas, k=K,
                               compute_dtype=jnp.bfloat16, stack_taps=False))
    out_bf16 = jax.block_until_ready(fwd_bf16(x, params))
    np.testing.assert_allclose(np.asarray(out_bf16), np.asarray(ref),
                               rtol=6e-2, atol=6e-2)

    print("KERNEL_OK")
</pallas_src>

<mosaic_0001>
module attributes {stable_mosaic.version = 11 : i64} {
  func.func @_conv_lead_kernel(%arg0: i32, %arg1: i32, %arg2: memref<1x16x16x128xf32, #tpu.memory_space<vmem>>, %arg3: memref<896x128xf32, #tpu.memory_space<vmem>>, %arg4: memref<1x16x16x128xf32, #tpu.memory_space<vmem>>) attributes {dimension_semantics = [#tpu.dimension_semantics<parallel>, #tpu.dimension_semantics<parallel>], iteration_bounds = array<i64: 2, 1>, scalar_prefetch = 0 : i64, scratch_operands = 0 : i64, tpu.core_type = #tpu.core_type<tc>, window_params = [{transform_indices = @transform_0, window_bounds = array<i64: 1, 16, 16, 128>}, {pipeline_mode = #tpu.pipeline_mode<synchronous>, transform_indices = @transform_1, window_bounds = array<i64: 896, 128>}, {transform_indices = @transform_2, window_bounds = array<i64: 1, 16, 16, 128>}]} {
    %c0 = arith.constant 0 : index
    %c0_0 = arith.constant 0 : index
    %c0_1 = arith.constant 0 : index
    %c0_2 = arith.constant 0 : index
    %0 = vector.load %arg2[%c0, %c0_0, %c0_1, %c0_2] : memref<1x16x16x128xf32, #tpu.memory_space<vmem>>, vector<1x16x16x128xf32>
    %1 = vector.shape_cast %0 : vector<1x16x16x128xf32> to vector<16x16x128xf32>
    %cst = arith.constant 0.000000e+00 : f32
    %2 = vector.broadcast %cst : f32 to vector<3x16x128xf32>
    %3 = vector.extract_strided_slice %1 {offsets = [0, 0, 0], sizes = [13, 16, 128], strides = [1, 1, 1]} : vector<16x16x128xf32> to vector<13x16x128xf32>
    %4 = tpu.concatenate %2, %3 in 0 : vector<3x16x128xf32>, vector<13x16x128xf32> -> vector<16x16x128xf32>
    %cst_3 = arith.constant 0.000000e+00 : f32
    %5 = vector.broadcast %cst_3 : f32 to vector<2x16x128xf32>
    %6 = vector.extract_strided_slice %1 {offsets = [0, 0, 0], sizes = [14, 16, 128], strides = [1, 1, 1]} : vector<16x16x128xf32> to vector<14x16x128xf32>
    %7 = tpu.concatenate %5, %6 in 0 : vector<2x16x128xf32>, vector<14x16x128xf32> -> vector<16x16x128xf32>
    %cst_4 = arith.constant 0.000000e+00 : f32
    %8 = vector.broadcast %cst_4 : f32 to vector<1x16x128xf32>
    %9 = vector.extract_strided_slice %1 {offsets = [0, 0, 0], sizes = [15, 16, 128], strides = [1, 1, 1]} : vector<16x16x128xf32> to vector<15x16x128xf32>
    %10 = tpu.concatenate %8, %9 in 0 : vector<1x16x128xf32>, vector<15x16x128xf32> -> vector<16x16x128xf32>
    %11 = vector.extract_strided_slice %1 {offsets = [1, 0, 0], sizes = [15, 16, 128], strides = [1, 1, 1]} : vector<16x16x128xf32> to vector<15x16x128xf32>
    %cst_5 = arith.constant 0.000000e+00 : f32
    %12 = vector.broadcast %cst_5 : f32 to vector<1x16x128xf32>
    %13 = tpu.concatenate %11, %12 in 0 : vector<15x16x128xf32>, vector<1x16x128xf32> -> vector<16x16x128xf32>
    %14 = vector.extract_strided_slice %1 {offsets = [2, 0, 0], sizes = [14, 16, 128], strides = [1, 1, 1]} : vector<16x16x128xf32> to vector<14x16x128xf32>
    %cst_6 = arith.constant 0.000000e+00 : f32
    %15 = vector.broadcast %cst_6 : f32 to vector<2x16x128xf32>
    %16 = tpu.concatenate %14, %15 in 0 : vector<14x16x128xf32>, vector<2x16x128xf32> -> vector<16x16x128xf32>
    %17 = vector.extract_strided_slice %1 {offsets = [3, 0, 0], sizes = [13, 16, 128], strides = [1, 1, 1]} : vector<16x16x128xf32> to vector<13x16x128xf32>
    %cst_7 = arith.constant 0.000000e+00 : f32
    %18 = vector.broadcast %cst_7 : f32 to vector<3x16x128xf32>
    %19 = tpu.concatenate %17, %18 in 0 : vector<13x16x128xf32>, vector<3x16x128xf32> -> vector<16x16x128xf32>
    %20 = tpu.concatenate %4, %7, %10, %1, %13, %16, %19 in 2 : vector<16x16x128xf32>, vector<16x16x128xf32>, vector<16x16x128xf32>, vector<16x16x128xf32>, vector<16x16x128xf32>, vector<16x16x128xf32>, vector<16x16x128xf32> -> vector<16x16x896xf32>
    %21 = vector.shape_cast %20 : vector<16x16x896xf32> to vector<256x896xf32>
    %c0_8 = arith.constant 0 : index
    %c0_9 = arith.constant 0 : index
    %22 = vector.load %arg3[%c0_8, %c0_9] : memref<896x128xf32, #tpu.memory_space<vmem>>, vector<896x128xf32>
    %cst_10 = arith.constant dense<0.000000e+00> : vector<256x128xf32>
    %23 = tpu.matmul %21, %22, %cst_10 {dimension_numbers = #tpu.dot_dimension_numbers<[1], [0], [0], [1], [0, 0, 1, 1], [], []>} : vector<256x896xf32>, vector<896x128xf32>, vector<256x128xf32> -> vector<256x128xf32>
    %24 = vector.shape_cast %23 : vector<256x128xf32> to vector<16x16x128xf32>
    %c0_11 = arith.constant 0 : index
    %c0_12 = arith.constant 0 : index
    %c0_13 = arith.constant 0 : index
    %c0_14 = arith.constant 0 : index
    %25 = vector.load %arg4[%c0_11, %c0_12, %c0_13, %c0_14] : memref<1x16x16x128xf32, #tpu.memory_space<vmem>>, vector<1x16x16x128xf32>
    %26 = vector.shape_cast %25 : vector<1x16x16x128xf32> to vector<16x16x128xf32>
    %27 = vector.shape_cast %24 : vector<16x16x128xf32> to vector<1x16x16x128xf32>
    tpu.vector_store %arg4[%c0_11, %c0_12, %c0_13, %c0_14], %27 {strides = array<i32>} : memref<1x16x16x128xf32, #tpu.memory_space<vmem>>, vector<1x16x16x128xf32>,
    return
  }
  func.func @transform_0(%arg0: i32, %arg1: i32) -> (i32, i32, i32, i32) {
    %c0_i32 = arith.constant 0 : i32
    %c0_i32_0 = arith.constant 0 : i32
    %c0_i32_1 = arith.constant 0 : i32
    return %arg0, %c0_i32, %arg1, %c0_i32_0 : i32, i32, i32, i32
  }
  func.func @transform_1(%arg0: i32, %arg1: i32) -> (i32, i32) {
    %c0_i32 = arith.constant 0 : i32
    %c0_i32_0 = arith.constant 0 : i32
    %c0_i32_1 = arith.constant 0 : i32
    return %c0_i32, %c0_i32_0 : i32, i32
  }
  func.func @transform_2(%arg0: i32, %arg1: i32) -> (i32, i32, i32, i32) {
    %c0_i32 = arith.constant 0 : i32
    %c0_i32_0 = arith.constant 0 : i32
    %c0_i32_1 = arith.constant 0 : i32
    return %arg0, %c0_i32, %arg1, %c0_i32_0 : i32, i32, i32, i32
  }
}

module attributes {stable_mosaic.version = 11 : i64} {
  func.func @_conv_lead_kernel(%arg0: i32, %arg1: i32, %arg2: memref<1x16x16x128xf32, #tpu.memory_space<vmem>>, %arg3: memref<896x128xf32, #tpu.memory_space<vmem>>, %arg4: memref<1x10x16x128xf32, #tpu.memory_space<vmem>>) attributes {dimension_semantics = [#tpu.dimension_semantics<parallel>, #tpu.dimension_semantics<parallel>], iteration_bounds = array<i64: 2, 1>, scalar_prefetch = 0 : i64, scratch_operands = 0 : i64, tpu.core_type = #tpu.core_type<tc>, window_params = [{transform_indices = @transform_0, window_bounds = array<i64: 1, 16, 16, 128>}, {pipeline_mode = #tpu.pipeline_mode<synchronous>, transform_indices = @transform_1, window_bounds = array<i64: 896, 128>}, {transform_indices = @transform_2, window_bounds = array<i64: 1, 10, 16, 128>}]} {
    %c0 = arith.constant 0 : index
    %c0_0 = arith.constant 0 : index
    %c0_1 = arith.constant 0 : index
    %c0_2 = arith.constant 0 : index
    %0 = vector.load %arg2[%c0, %c0_0, %c0_1, %c0_2] : memref<1x16x16x128xf32, #tpu.memory_space<vmem>>, vector<1x16x16x128xf32>
    %1 = vector.shape_cast %0 : vector<1x16x16x128xf32> to vector<16x16x128xf32>
    %2 = vector.extract_strided_slice %1 {offsets = [0, 0, 0], sizes = [10, 16, 128], strides = [1, 1, 1]} : vector<16x16x128xf32> to vector<10x16x128xf32>
    %3 = vector.extract_strided_slice %1 {offsets = [1, 0, 0], sizes = [10, 16, 128], strides = [1, 1, 1]} : vector<16x16x128xf32> to vector<10x16x128xf32>
    %4 = vector.extract_strided_slice %1 {offsets = [2, 0, 0], sizes = [10, 16, 128], strides = [1, 1, 1]} : vector<16x16x128xf32> to vector<10x16x128xf32>
    %5 = vector.extract_strided_slice %1 {offsets = [3, 0, 0], sizes = [10, 16, 128], strides = [1, 1, 1]} : vector<16x16x128xf32> to vector<10x16x128xf32>
    %6 = vector.extract_strided_slice %1 {offsets = [4, 0, 0], sizes = [10, 16, 128], strides = [1, 1, 1]} : vector<16x16x128xf32> to vector<10x16x128xf32>
    %7 = vector.extract_strided_slice %1 {offsets = [5, 0, 0], sizes = [10, 16, 128], strides = [1, 1, 1]} : vector<16x16x128xf32> to vector<10x16x128xf32>
    %8 = vector.extract_strided_slice %1 {offsets = [6, 0, 0], sizes = [10, 16, 128], strides = [1, 1, 1]} : vector<16x16x128xf32> to vector<10x16x128xf32>
    %9 = tpu.concatenate %2, %3, %4, %5, %6, %7, %8 in 2 : vector<10x16x128xf32>, vector<10x16x128xf32>, vector<10x16x128xf32>, vector<10x16x128xf32>, vector<10x16x128xf32>, vector<10x16x128xf32>, vector<10x16x128xf32> -> vector<10x16x896xf32>
    %10 = vector.shape_cast %9 : vector<10x16x896xf32> to vector<160x896xf32>
    %c0_3 = arith.constant 0 : index
    %c0_4 = arith.constant 0 : index
    %11 = vector.load %arg3[%c0_3, %c0_4] : memref<896x128xf32, #tpu.memory_space<vmem>>, vector<896x128xf32>
    %cst = arith.constant dense<0.000000e+00> : vector<160x128xf32>
    %12 = tpu.matmul %10, %11, %cst {dimension_numbers = #tpu.dot_dimension_numbers<[1], [0], [0], [1], [0, 0, 1, 1], [], []>} : vector<160x896xf32>, vector<896x128xf32>, vector<160x128xf32> -> vector<160x128xf32>
    %13 = vector.shape_cast %12 : vector<160x128xf32> to vector<10x16x128xf32>
    %c0_5 = arith.constant 0 : index
    %c0_6 = arith.constant 0 : index
    %c0_7 = arith.constant 0 : index
    %c0_8 = arith.constant 0 : index
    %14 = vector.load %arg4[%c0_5, %c0_6, %c0_7, %c0_8] : memref<1x10x16x128xf32, #tpu.memory_space<vmem>>, vector<1x10x16x128xf32>
    %15 = vector.shape_cast %14 : vector<1x10x16x128xf32> to vector<10x16x128xf32>
    %16 = vector.shape_cast %13 : vector<10x16x128xf32> to vector<1x10x16x128xf32>
    tpu.vector_store %arg4[%c0_5, %c0_6, %c0_7, %c0_8], %16 {strides = array<i32>} : memref<1x10x16x128xf32, #tpu.memory_space<vmem>>, vector<1x10x16x128xf32>,
    return
  }
  func.func @transform_0(%arg0: i32, %arg1: i32) -> (i32, i32, i32, i32) {
    %c0_i32 = arith.constant 0 : i32
    %c0_i32_0 = arith.constant 0 : i32
    %c0_i32_1 = arith.constant 0 : i32
    return %arg0, %c0_i32, %arg1, %c0_i32_0 : i32, i32, i32, i32
  }
  func.func @transform_1(%arg0: i32, %arg1: i32) -> (i32, i32) {
    %c0_i32 = arith.constant 0 : i32
    %c0_i32_0 = arith.constant 0 : i32
    %c0_i32_1 = arith.constant 0 : i32
    return %c0_i32, %c0_i32_0 : i32, i32
  }
  func.func @transform_2(%arg0: i32, %arg1: i32) -> (i32, i32, i32, i32) {
    %c0_i32 = arith.constant 0 : i32
    %c0_i32_0 = arith.constant 0 : i32
    %c0_i32_1 = arith.constant 0 : i32
    return %arg0, %c0_i32, %arg1, %c0_i32_0 : i32, i32, i32, i32
  }
}

</mosaic_0001>

<bundles_post_ra>
// kernel: gcm_forward_pallas.6
= control target key start
LH: loop header
LB: loop body
LE: loop exit
PB: predicated region body
PF: predicated region fallthrough
CT: control target
= control target key end

     0   :  { %s1553_s9 = smov 0   ;;  %s1555_s10 = smov 0   ;;  %s2295_s0 = inlined_call_operand.vmem [shape: f32[2,16,16,128], index: 0, kind: input, shape index: {}]   ;;  %s2296_s1 = inlined_call_operand.vmem [shape: f32[896,128], index: 1, kind: input, shape index: {}]   ;;  %s2297_s2 = inlined_call_operand.vmem [shape: f32[2,10,16,128], index: 2, kind: output, shape index: {}]  }
   0x1   :  { %s1557_s11 = smov 0  }
   0x2 LB: > { %s24_s12 = sadd.s32 1, %s1531_s10  ;;  %p1098_p0 = scmp.ge.s32.totalorder %s1535_s11, 1  ;;  %s1535_s11 = sphi %s1557_s11, %s12_s11   ;;  %s1531_s10 = sphi %s1555_s10, %s2299_s10   ;;  %s1527_s9 = sphi %s1553_s9, %s2298_s9  }
   0x3   : > { %p26_p1 = scmp.ge.s32.totalorder %s24_s12, 2  ;;  %p133_p2 = scmp.lt.s32.totalorder %s1535_s11, 3 }
   0x5   : > { %s2301_s12 = smov (%p26_p1, %s24_s12), 0  ;;  %p134_p3 = pnand %p1098_p0, %p133_p2 }
   0x6   : > { %v215_v0 = vld [vmem:[%s2296_s1] sm:$0xff] (!%p134_p3)  ;;  %v216_v1 = vld [vmem:[%s2296_s1 + $0x8] sm:$0xff] (!%p134_p3)  ;;  %v1537_v3 = vmov (!%p134_p3), 0.0|0.0   ;;  %v217_v6 = vld [vmem:[%s2296_s1 + $0x10] sm:$0xff] (!%p134_p3)  ;;  %p164_p4 = scmp.lt.s32.totalorder (!%p134_p3), %s1527_s9, 1 }
   0x7   : > { %137 = sbr.rel (%p134_p3) target bundleno = 433 (0x1b1), region = 28  ;;  %v247_v2 = vld [vmem:[%s2296_s1 + $0x100] sm:$0xff] (!%p134_p3)  ;;  %1203 = vmatprep.subr.bf16.mxu1 (!%p134_p3), %v1537_v3  ;;  %1251 = vmatprep.subr.bf16.mxu0 (!%p134_p3), %v1537_v3  ;;  %v1204_v4 = vpack.c.bf16 (!%p134_p3), %v216_v1, %v215_v0  ;;  %v248_v5 = vld [vmem:[%s2296_s1 + $0x108] sm:$0xff] (!%p134_p3)  ;;  %v218_v7 = vld [vmem:[%s2296_s1 + $0x18] sm:$0xff] (!%p134_p3) }
   0x8   : > { %v1593_v8 = vpack.c.bf16 (!%p134_p3), %v248_v5, %v247_v2  ;;  %v249_v9 = vld [vmem:[%s2296_s1 + $0x110] sm:$0xff] (!%p134_p3)  ;;  %v250_v10 = vld [vmem:[%s2296_s1 + $0x118] sm:$0xff] (!%p134_p3)  ;;  %v1207_v11 = vpack.c.bf16 (!%p134_p3), %v218_v7, %v217_v6  ;;  %v219_v13 = vld [vmem:[%s2296_s1 + $0x20] sm:$0xff] (!%p134_p3) }
   0x9   : > { %1205 = vmatpush1.bf16.msra.mxu1 (!%p134_p3), %v1204_v4  ;;  %v1603_v12 = vpack.c.bf16 (!%p134_p3), %v250_v10, %v249_v9  ;;  %v220_v14 = vld [vmem:[%s2296_s1 + $0x28] sm:$0xff] (!%p134_p3)  ;;  %v251_v15 = vld [vmem:[%s2296_s1 + $0x120] sm:$0xff] (!%p134_p3)  ;;  %v221_v19 = vld [vmem:[%s2296_s1 + $0x30] sm:$0xff] (!%p134_p3) }
   0xa   : > { %1253 = vmatpush1.bf16.msra.mxu0 (!%p134_p3), %v1593_v8  ;;  %1206 = vmatprep.subr.bf16.mxu1 (!%p134_p3), %v1537_v3  ;;  %v252_v16 = vld [vmem:[%s2296_s1 + $0x128] sm:$0xff] (!%p134_p3)  ;;  %v1210_v17 = vpack.c.bf16 (!%p134_p3), %v220_v14, %v219_v13  ;;  %v222_v20 = vld [vmem:[%s2296_s1 + $0x38] sm:$0xff] (!%p134_p3)  ;;  %v253_v21 = vld [vmem:[%s2296_s1 + $0x130] sm:$0xff] (!%p134_p3) }
   0xb   : > { %1254 = vmatprep.subr.bf16.mxu0 (!%p134_p3), %v1537_v3  ;;  %v1621_v18 = vpack.c.bf16 (!%p134_p3), %v252_v16, %v251_v15  ;;  %v254_v22 = vld [vmem:[%s2296_s1 + $0x138] sm:$0xff] (!%p134_p3)  ;;  %v1213_v23 = vpack.c.bf16 (!%p134_p3), %v222_v20, %v221_v19  ;;  %v223_v25 = vld [vmem:[%s2296_s1 + $0x40] sm:$0xff] (!%p134_p3)  ;;  %v224_v26 = vld [vmem:[%s2296_s1 + $0x48] sm:$0xff] (!%p134_p3) }
   0xc   : > { %v1641_v24 = vpack.c.bf16 (!%p134_p3), %v254_v22, %v253_v21  ;;  %v255_v27 = vld [vmem:[%s2296_s1 + $0x140] sm:$0xff] (!%p134_p3)  ;;  %v256_v28 = vld [vmem:[%s2296_s1 + $0x148] sm:$0xff] (!%p134_p3)  ;;  %v1216_v29 = vpack.c.bf16 (!%p134_p3), %v224_v26, %v223_v25  ;;  %v225_v31 = vld [vmem:[%s2296_s1 + $0x50] sm:$0xff] (!%p134_p3) }
   0xd   : > { %1208 = vmatpush1.bf16.msra.mxu1 (!%p134_p3), %v1207_v11  ;;  %v1659_v30 = vpack.c.bf16 (!%p134_p3), %v256_v28, %v255_v27  ;;  %v226_v32 = vld [vmem:[%s2296_s1 + $0x58] sm:$0xff] (!%p134_p3)  ;;  %v257_v33 = vld [vmem:[%s2296_s1 + $0x150] sm:$0xff] (!%p134_p3)  ;;  %v227_v37 = vld [vmem:[%s2296_s1 + $0x60] sm:$0xff] (!%p134_p3) }
   0xe   : > { %1256 = vmatpush1.bf16.msra.mxu0 %v1603_v12  ;;  %1209 = vmatprep.subr.bf16.mxu1 %v1537_v3  ;;  %s2303_s9 = smov (!%p164_p4, %s1527_s9), 1  ;;  %v258_v34 = vld [vmem:[%s2296_s1 + $0x158] sm:$0xff]  ;;  %v1219_v35 = vpack.c.bf16 %v226_v32, %v225_v31  ;;  %v228_v38 = vld [vmem:[%s2296_s1 + $0x68] sm:$0xff]  ;;  %v259_v39 = vld [vmem:[%s2296_s1 + $0x160] sm:$0xff] }
   0xf   : > { %1257 = vmatprep.subr.bf16.mxu0 %v1537_v3  ;;  %s1104_s29 = sshll.u32 %s2303_s9, 8  ;;  %v1681_v36 = vpack.c.bf16 %v258_v34, %v257_v33  ;;  %v260_v40 = vld [vmem:[%s2296_s1 + $0x168] sm:$0xff]  ;;  %v1222_v43 = vpack.c.bf16 %v228_v38, %v227_v37  ;;  %v229_v45 = vld [vmem:[%s2296_s1 + $0x70] sm:$0xff]  ;;  %v230_v46 = vld [vmem:[%s2296_s1 + $0x78] sm:$0xff] }
  0x10   : > { %s1677_s16 = scalar_lea.vmem %s2295_s0, %s1104_s29  ;;  %v1706_v44 = vpack.c.bf16 %v260_v40, %v259_v39  ;;  %v261_v47 = vld [vmem:[%s2296_s1 + $0x170] sm:$0xff]  ;;  %v262_v48 = vld [vmem:[%s2296_s1 + $0x178] sm:$0xff]  ;;  %v1225_v49 = vpack.c.bf16 %v230_v46, %v229_v45  ;;  %v231_v51 = vld [vmem:[%s2296_s1 + $0x80] sm:$0xff] }
  0x11   : > { %1211 = vmatpush1.bf16.msra.mxu1 %v1210_v17  ;;  %v1697_v41 = vld [vmem:[%s1677_s16 + $0x10] sm:$0xff]  ;;  %v1723_v50 = vpack.c.bf16 %v262_v48, %v261_v47  ;;  %v232_v52 = vld [vmem:[%s2296_s1 + $0x88] sm:$0xff]  ;;  %v263_v53 = vld [vmem:[%s2296_s1 + $0x180] sm:$0xff] }
  0x12   : > { %1259 = vmatpush1.bf16.msra.mxu0 %v1621_v18  ;;  %1212 = vmatprep.subr.bf16.mxu1 %v1537_v3  ;;  %v1700_v42 = vld [vmem:[%s1677_s16 + $0x30] sm:$0xff]  ;;  %v264_v54 = vld [vmem:[%s2296_s1 + $0x188] sm:$0xff]  ;;  %v1228_v55 = vpack.c.bf16 %v232_v52, %v231_v51  ;;  %v234_v58 = vld [vmem:[%s2296_s1 + $0x98] sm:$0xff] }
  0x13   : > { %1260 = vmatprep.subr.bf16.mxu0 %v1537_v3  ;;  %391 = vmatprep.mubr.f32.mxu1 %v1697_v41  ;;  %v1740_v56 = vpack.c.bf16 %v264_v54, %v263_v53  ;;  %v233_v57 = vld [vmem:[%s2296_s1 + $0x90] sm:$0xff]  ;;  %v266_v60 = vld [vmem:[%s2296_s1 + $0x198] sm:$0xff]  ;;  %v235_v63 = vld [vmem:[%s2296_s1 + $0xa0] sm:$0xff] }
  0x14   : > { %556 = vmatprep.mubr.f32.mxu0 %v1700_v42  ;;  %v265_v59 = vld [vmem:[%s2296_s1 + $0x190] sm:$0xff]  ;;  %v1231_v61 = vpack.c.bf16 %v234_v58, %v233_v57  ;;  %v236_v0 = vld [vmem:[%s2296_s1 + $0xa8] sm:$0xff]  ;;  %v267_v1 = vld [vmem:[%s2296_s1 + $0x1a0] sm:$0xff] }
  0x15   : > { %1214 = vmatpush1.bf16.msra.mxu1 %v1213_v23  ;;  %v1757_v62 = vpack.c.bf16 %v266_v60, %v265_v59  ;;  %v268_v2 = vld [vmem:[%s2296_s1 + $0x1a8] sm:$0xff]  ;;  %v1234_v4 = vpack.c.bf16 %v236_v0, %v235_v63  ;;  %v237_v6 = vld [vmem:[%s2296_s1 + $0xb0] sm:$0xff]  ;;  %v238_v7 = vld [vmem:[%s2296_s1 + $0xb8] sm:$0xff] }
  0x16   : > { %1262 = vmatpush1.bf16.msra.mxu0 %v1641_v24  ;;  %1215 = vmatprep.subr.bf16.mxu1 %v1537_v3  ;;  %v1774_v5 = vpack.c.bf16 %v268_v2, %v267_v1  ;;  %v269_v9 = vld [vmem:[%s2296_s1 + $0x1b0] sm:$0xff]  ;;  %v270_v10 = vld [vmem:[%s2296_s1 + $0x1b8] sm:$0xff]  ;;  %v1237_v11 = vpack.c.bf16 %v238_v7, %v237_v6  ;;  %v239_v14 = vld [vmem:[%s2296_s1 + $0xc0] sm:$0xff] }
  0x17   : > { %1263 = vmatprep.subr.bf16.mxu0 %v1537_v3  ;;  %v1791_v13 = vpack.c.bf16 %v270_v10, %v269_v9  ;;  %v240_v15 = vld [vmem:[%s2296_s1 + $0xc8] sm:$0xff]  ;;  %v271_v16 = vld [vmem:[%s2296_s1 + $0x1c0] sm:$0xff]  ;;  %v241_v21 = vld [vmem:[%s2296_s1 + $0xd0] sm:$0xff] }
  0x18   : > { %v272_v17 = vld [vmem:[%s2296_s1 + $0x1c8] sm:$0xff]  ;;  %v1240_v19 = vpack.c.bf16 %v240_v15, %v239_v14  ;;  %v242_v22 = vld [vmem:[%s2296_s1 + $0xd8] sm:$0xff]  ;;  %v273_v23 = vld [vmem:[%s2296_s1 + $0x1d0] sm:$0xff] }
  0x19   : > { %1217 = vmatpush1.bf16.msra.mxu1 %v1216_v29  ;;  %v1808_v20 = vpack.c.bf16 %v272_v17, %v271_v16  ;;  %v274_v25 = vld [vmem:[%s2296_s1 + $0x1d8] sm:$0xff]  ;;  %v1243_v26 = vpack.c.bf16 %v242_v22, %v241_v21  ;;  %v243_v28 = vld [vmem:[%s2296_s1 + $0xe0] sm:$0xff]  ;;  %v244_v29 = vld [vmem:[%s2296_s1 + $0xe8] sm:$0xff] }
  0x1a   : > { %1265 = vmatpush1.bf16.msra.mxu0 %v1659_v30  ;;  %1218 = vmatprep.subr.bf16.mxu1 %v1537_v3  ;;  %v1825_v27 = vpack.c.bf16 %v274_v25, %v273_v23  ;;  %v275_v31 = vld [vmem:[%s2296_s1 + $0x1e0] sm:$0xff]  ;;  %v276_v32 = vld [vmem:[%s2296_s1 + $0x1e8] sm:$0xff]  ;;  %v1246_v33 = vpack.c.bf16 %v244_v29, %v243_v28  ;;  %v246_v37 = vld [vmem:[%s2296_s1 + $0xf8] sm:$0xff] }
  0x1b   : > { %1266 = vmatprep.subr.bf16.mxu0 %v1537_v3  ;;  %v1842_v34 = vpack.c.bf16 %v276_v32, %v275_v31  ;;  %v277_v38 = vld [vmem:[%s2296_s1 + $0x1f0] sm:$0xff]  ;;  %v278_v39 = vld [vmem:[%s2296_s1 + $0x1f8] sm:$0xff]  ;;  %v279_v45 = vld [vmem:[%s2296_s1 + $0x200] sm:$0xff] }
  0x1c   : > { %v280_v46 = vld [vmem:[%s2296_s1 + $0x208] sm:$0xff]  ;;  %v183_v47 = vld [vmem:[%s1677_s16] sm:$0xff]  ;;  %v186_v51 = vld [vmem:[%s1677_s16 + $0x18] sm:$0xff] }
  0x1d   : > { %1220 = vmatpush1.bf16.msra.mxu1 %v1219_v35  ;;  %v245_v35 = vld [vmem:[%s2296_s1 + $0xf0] sm:$0xff]  ;;  %v187_v48 = vld [vmem:[%s1677_s16 + $0x20] sm:$0xff]  ;;  %v282_v53 = vld [vmem:[%s2296_s1 + $0x218] sm:$0xff] }
  0x1e   : > { %1268 = vmatpush1.bf16.msra.mxu0 %v1681_v36  ;;  %1221 = vmatprep.subr.bf16.mxu1 %v1537_v3  ;;  %v1249_v40 = vpack.c.bf16 %v246_v37, %v245_v35  ;;  %v281_v52 = vld [vmem:[%s2296_s1 + $0x210] sm:$0xff]  ;;  %v1881_v54 = vld [vmem:[%s1677_s16 + $0x38] sm:$0xff]  ;;  %v188_v57 = vld [vmem:[%s1677_s16 + $0x28] sm:$0xff] }
  0x1f   : > { %1269 = vmatprep.subr.bf16.mxu0 %v1537_v3  ;;  %v1303_v58 = vpack.c.bf16 %v282_v53, %v281_v52  ;;  %v283_v59 = vld [vmem:[%s2296_s1 + $0x220] sm:$0xff]  ;;  %v284_v60 = vld [vmem:[%s2296_s1 + $0x228] sm:$0xff]  ;;  %v285_v0 = vld [vmem:[%s2296_s1 + $0x230] sm:$0xff] }
  0x20   : > { %v1902_v63 = vld [vmem:[%s1677_s16 + $0x48] sm:$0xff]  ;;  %v286_v1 = vld [vmem:[%s2296_s1 + $0x238] sm:$0xff]  ;;  %v1917_v2 = vld [vmem:[%s1677_s16 + $0x50] sm:$0xff] }
  0x21   : > { %1223 = vmatpush1.bf16.msra.mxu1 %v1222_v43  ;;  %v1859_v43 = vpack.c.bf16 %v278_v39, %v277_v38  ;;  %v1932_v6 = vld [vmem:[%s1677_s16 + $0x58] sm:$0xff]  ;;  %v289_v7 = vld [vmem:[%s2296_s1 + $0x250] sm:$0xff]  ;;  %v1947_v10 = vld [vmem:[%s1677_s16 + $0x60] sm:$0xff] }
  0x22   : > { %1271 = vmatpush1.bf16.msra.mxu0 %v1706_v44  ;;  %1224 = vmatprep.subr.bf16.mxu1 %v1537_v3  ;;  %v290_v9 = vld [vmem:[%s2296_s1 + $0x258] sm:$0xff]  ;;  %v292_v14 = vld [vmem:[%s2296_s1 + $0x268] sm:$0xff]  ;;  %v293_v16 = vld [vmem:[%s2296_s1 + $0x270] sm:$0xff] }
  0x23   : > { %1272 = vmatprep.subr.bf16.mxu0 %v1537_v3  ;;  %v1962_v15 = vld [vmem:[%s1677_s16 + $0x68] sm:$0xff]  ;;  %v294_v17 = vld [vmem:[%s2296_s1 + $0x278] sm:$0xff]  ;;  %v297_v23 = vld [vmem:[%s2296_s1 + $0x290] sm:$0xff] }
  0x24   : > { %v296_v21 = vld [vmem:[%s2296_s1 + $0x288] sm:$0xff]  ;;  %v1993_v22 = vld [vmem:[%s1677_s16 + $0x78] sm:$0xff]  ;;  %v299_v28 = vld [vmem:[%s2296_s1 + $0x2a0] sm:$0xff] }
  0x25   : > { %1226 = vmatpush1.bf16.msra.mxu1 %v1225_v49  ;;  %v1300_v49 = vpack.c.bf16 %v280_v46, %v279_v45  ;;  %v298_v25 = vld [vmem:[%s2296_s1 + $0x298] sm:$0xff]  ;;  %v300_v29 = vld [vmem:[%s2296_s1 + $0x2a8] sm:$0xff]  ;;  %v2041_v37 = vld [vmem:[%s1677_s16 + $0x90] sm:$0xff] }
  0x26   : > { %1274 = vmatpush1.bf16.msra.mxu0 %v1723_v50  ;;  %1227 = vmatprep.subr.bf16.mxu1 %v1537_v3  ;;  %v1330_v31 = vpack.c.bf16 %v300_v29, %v299_v28  ;;  %v2025_v32 = vld [vmem:[%s1677_s16 + $0x88] sm:$0xff]  ;;  %v306_v45 = vld [vmem:[%s2296_s1 + $0x2d8] sm:$0xff]  ;;  %v311_v53 = vld [vmem:[%s2296_s1 + $0x300] sm:$0xff] }
  0x27   : > { %1275 = vmatprep.subr.bf16.mxu0 %v1537_v3  ;;  %v304_v38 = vld [vmem:[%s2296_s1 + $0x2c8] sm:$0xff]  ;;  %v310_v52 = vld [vmem:[%s2296_s1 + $0x2f8] sm:$0xff] }
  0x29   : > { %1229 = vmatpush1.bf16.msra.mxu1 %v1228_v55  ;;  %v184_v55 = vld [vmem:[%s1677_s16 + $0x8] sm:$0xff] }
  0x2a   : > { %1277 = vmatpush1.bf16.msra.mxu0 %v1740_v56  ;;  %1230 = vmatprep.subr.bf16.mxu1 %v1537_v3 }
  0x2b   : > { %1278 = vmatprep.subr.bf16.mxu0 %v1537_v3 }
  0x2d   : > { %1232 = vmatpush1.bf16.msra.mxu1 %v1231_v61  ;;  %v1306_v61 = vpack.c.bf16 %v284_v60, %v283_v59  ;;  %v316_v59 = vld [vmem:[%s2296_s1 + $0x328] sm:$0xff]  ;;  %v317_v60 = vld [vmem:[%s2296_s1 + $0x330] sm:$0xff] }
  0x2e   : > { %1280 = vmatpush1.bf16.msra.mxu0 %v1757_v62  ;;  %1233 = vmatprep.subr.bf16.mxu1 %v1537_v3 }
  0x2f   : > { %1281 = vmatprep.subr.bf16.mxu0 %v1537_v3 }
  0x31   : > { %1235 = vmatpush1.bf16.msra.mxu1 %v1234_v4  ;;  %v288_v4 = vld [vmem:[%s2296_s1 + $0x248] sm:$0xff] }
  0x32   : > { %1283 = vmatpush1.bf16.msra.mxu0 %v1774_v5  ;;  %1236 = vmatprep.subr.bf16.mxu1 %v1537_v3 }
  0x33   : > { %1284 = vmatprep.subr.bf16.mxu0 %v1537_v3 }
  0x35   : > { %1238 = vmatpush1.bf16.msra.mxu1 %v1237_v11  ;;  %v291_v11 = vld [vmem:[%s2296_s1 + $0x260] sm:$0xff] }
  0x36   : > { %1286 = vmatpush1.bf16.msra.mxu0 %v1791_v13  ;;  %1239 = vmatprep.subr.bf16.mxu1 %v1537_v3 }
  0x37   : > { %1287 = vmatprep.subr.bf16.mxu0 %v1537_v3 }
  0x39   : > { %1241 = vmatpush1.bf16.msra.mxu1 %v1240_v19  ;;  %v1977_v19 = vld [vmem:[%s1677_s16 + $0x70] sm:$0xff] }
  0x3a   : > { %1289 = vmatpush1.bf16.msra.mxu0 %v1808_v20  ;;  %1242 = vmatprep.subr.bf16.mxu1 %v1537_v3 }
  0x3b   : > { %1290 = vmatprep.subr.bf16.mxu0 %v1537_v3 }
  0x3d   : > { %1244 = vmatpush1.bf16.msra.mxu1 %v1243_v26  ;;  %v2009_v26 = vld [vmem:[%s1677_s16 + $0x80] sm:$0xff] }
  0x3e   : > { %1292 = vmatpush1.bf16.msra.mxu0 %v1825_v27  ;;  %1245 = vmatprep.subr.bf16.mxu1 %v1537_v3 }
  0x3f   : > { %1293 = vmatprep.subr.bf16.mxu0 %v1537_v3 }
  0x41   : > { %1247 = vmatpush1.bf16.msra.mxu1 %v1246_v33  ;;  %v302_v33 = vld [vmem:[%s2296_s1 + $0x2b8] sm:$0xff] }
  0x42   : > { %1295 = vmatpush1.bf16.msra.mxu0 %v1842_v34  ;;  %1248 = vmatprep.subr.bf16.mxu1 %v1537_v3 }
  0x43   : > { %1296 = vmatprep.subr.bf16.mxu0 %v1537_v3 }
  0x45   : > { %1250 = vmatpush1.bf16.msra.mxu1 %v1249_v40  ;;  %v2057_v40 = vld [vmem:[%s1677_s16 + $0x98] sm:$0xff] }
  0x46   : > { %1298 = vmatpush1.bf16.msra.mxu0 %v1859_v43  ;;  %1379 = vmatprep.subr.bf16.mxu1 %v1537_v3 }
  0x47   : > { %1299 = vmatprep.subr.bf16.mxu0 %v1537_v3 }
  0x48   : > { %392 = vmatmul.mubr.f32.vlgmr.msra.gmra.mrb[0].mxu1 %v183_v47  ;;  %v2073_v47 = vld [vmem:[%s1677_s16 + $0xa0] sm:$0xff] }
  0x49   : > { %557 = vmatmul.mubr.f32.vlgmr.msra.gmra.mrb[0].mxu0 %v187_v48  ;;  %1395 = vmatpush1.bf16.msra.mxu1 %v1593_v8  ;;  %v1896_v8 = vld [vmem:[%s1677_s16 + $0x40] sm:$0xff] }
  0x4a   : > { %1301 = vmatpush1.bf16.msra.mxu0 %v1300_v49  ;;  %396 = vmatprep.mubr.f32.mxu1 %v186_v51 }
  0x4b   : > { %561 = vmatprep.mubr.f32.mxu0 %v1881_v54  ;;  %1302 = vmatprep.subr.bf16.mxu0 %v1537_v3 }
  0x4c   : > { %397 = vmatmul.mubr.f32.gmra.mrb[2].mxu1 %v184_v55  ;;  %1380 = vmatprep.subr.bf16.mxu1 %v1537_v3 }
  0x4d   : > { %562 = vmatmul.mubr.f32.gmra.mrb[2].mxu0 %v188_v57  ;;  %401 = vmatprep.mubr.f32.mxu1 %v187_v48 }
  0x4e   : > { %1304 = vmatpush1.bf16.msra.mxu0 %v1303_v58  ;;  %1396 = vmatpush1.bf16.msra.mxu1 %v1603_v12  ;;  %v1309_v12 = vpack.c.bf16 %v286_v1, %v285_v0  ;;  %v315_v58 = vld [vmem:[%s2296_s1 + $0x320] sm:$0xff]  ;;  %v320_v1 = vld [vmem:[%s2296_s1 + $0x348] sm:$0xff] }
  0x4f   : > { %566 = vmatprep.mubr.f32.mxu0 %v1896_v8  ;;  %1305 = vmatprep.subr.bf16.mxu0 %v1537_v3  ;;  %v319_v0 = vld [vmem:[%s2296_s1 + $0x340] sm:$0xff] }
  0x50   : > { %402 = vmatmul.mubr.f32.gmra.mrb[4].mxu1 %v1697_v41  ;;  %1381 = vmatprep.subr.bf16.mxu1 %v1537_v3  ;;  %v287_v41 = vld [vmem:[%s2296_s1 + $0x240] sm:$0xff] }
  0x51   : > { %567 = vmatmul.mubr.f32.gmra.mrb[4].mxu0 %v1700_v42  ;;  %406 = vmatprep.mubr.f32.mxu1 %v188_v57 }
  0x52   : > { %1307 = vmatpush1.bf16.msra.mxu0 %v1306_v61  ;;  %571 = vmatprep.mubr.f32.mxu0 %v1902_v63 }
  0x53   : > { %1397 = vmatpush1.bf16.msra.mxu1 %v1621_v18  ;;  %1308 = vmatprep.subr.bf16.mxu0 %v1537_v3  ;;  %v1312_v18 = vpack.c.bf16 %v288_v4, %v287_v41  ;;  %v321_v41 = vld [vmem:[%s2296_s1 + $0x350] sm:$0xff]  ;;  %v322_v4 = vld [vmem:[%s2296_s1 + $0x358] sm:$0xff] }
  0x54   : > { %407 = vmatmul.mubr.f32.gmra.mrb[6].mxu1 %v186_v51  ;;  %1382 = vmatprep.subr.bf16.mxu1 %v1537_v3  ;;  %v2089_v51 = vld [vmem:[%s1677_s16 + $0xa8] sm:$0xff] }
  0x55   : > { %572 = vmatmul.mubr.f32.gmra.mrb[6].mxu0 %v1881_v54  ;;  %411 = vmatprep.mubr.f32.mxu1 %v1700_v42 }
  0x56   : > { %1310 = vmatpush1.bf16.msra.mxu0 %v1309_v12  ;;  %576 = vmatprep.mubr.f32.mxu0 %v1917_v2  ;;  %v1363_v12 = vpack.c.bf16 %v320_v1, %v319_v0 }
  0x57   : > { %1311 = vmatprep.subr.bf16.mxu0 %v1537_v3  ;;  %1398 = vmatpush1.bf16.msra.mxu1 %v1641_v24  ;;  %v1315_v24 = vpack.c.bf16 %v290_v9, %v289_v7  ;;  %v323_v7 = vld [vmem:[%s2296_s1 + $0x360] sm:$0xff]  ;;  %v324_v9 = vld [vmem:[%s2296_s1 + $0x368] sm:$0xff] }
  0x58   : > { %412 = vmatmul.mubr.f32.gmra.mrb[8].mxu1 %v187_v48  ;;  %1383 = vmatprep.subr.bf16.mxu1 %v1537_v3  ;;  %v308_v48 = vld [vmem:[%s2296_s1 + $0x2e8] sm:$0xff] }
  0x59   : > { %577 = vmatmul.mubr.f32.gmra.mrb[8].mxu0 %v1896_v8  ;;  %416 = vmatprep.mubr.f32.mxu1 %v1881_v54 }
  0x5a   : > { %1313 = vmatpush1.bf16.msra.mxu0 %v1312_v18  ;;  %581 = vmatprep.mubr.f32.mxu0 %v1932_v6  ;;  %v1367_v18 = vpack.c.bf16 %v322_v4, %v321_v41 }
  0x5b   : > { %1314 = vmatprep.subr.bf16.mxu0 %v1537_v3  ;;  %1399 = vmatpush1.bf16.msra.mxu1 %v1659_v30  ;;  %v1318_v30 = vpack.c.bf16 %v292_v14, %v291_v11  ;;  %v208_v11 = vld [vmem:[%s1677_s16 + $0xc8] sm:$0xff]  ;;  %v325_v14 = vld [vmem:[%s2296_s1 + $0x370] sm:$0xff] }
  0x5c   : > { %417 = vmatmul.mubr.f32.gmra.mrb[10].mxu1 %v188_v57  ;;  %1384 = vmatprep.subr.bf16.mxu1 %v1537_v3  ;;  %v313_v57 = vld [vmem:[%s2296_s1 + $0x310] sm:$0xff] }
  0x5d   : > { %582 = vmatmul.mubr.f32.gmra.mrb[10].mxu0 %v1902_v63  ;;  %421 = vmatprep.mubr.f32.mxu1 %v1896_v8 }
  0x5e   : > { %1316 = vmatpush1.bf16.msra.mxu0 %v1315_v24  ;;  %586 = vmatprep.mubr.f32.mxu0 %v1947_v10  ;;  %v1371_v24 = vpack.c.bf16 %v324_v9, %v323_v7 }
  0x5f   : > { %1317 = vmatprep.subr.bf16.mxu0 %v1537_v3  ;;  %1400 = vmatpush1.bf16.msra.mxu1 %v1681_v36  ;;  %v1321_v36 = vpack.c.bf16 %v294_v17, %v293_v16  ;;  %v209_v17 = vld [vmem:[%s1677_s16 + $0xd0] sm:$0xff] }
  0x60   : > { %422 = vmatmul.mubr.f32.gmra.mrb[12].mxu1 %v1700_v42  ;;  %1385 = vmatprep.subr.bf16.mxu1 %v1537_v3  ;;  %v295_v42 = vld [vmem:[%s2296_s1 + $0x280] sm:$0xff] }
  0x61   : > { %587 = vmatmul.mubr.f32.gmra.mrb[12].mxu0 %v1917_v2  ;;  %426 = vmatprep.mubr.f32.mxu1 %v1902_v63 }
  0x62   : > { %1319 = vmatpush1.bf16.msra.mxu0 %v1318_v30  ;;  %591 = vmatprep.mubr.f32.mxu0 %v1962_v15  ;;  %v326_v30 = vld [vmem:[%s2296_s1 + $0x378] sm:$0xff] }
  0x63   : > { %1320 = vmatprep.subr.bf16.mxu0 %v1537_v3  ;;  %1401 = vmatpush1.bf16.msra.mxu1 %v1706_v44  ;;  %v1324_v44 = vpack.c.bf16 %v296_v21, %v295_v42  ;;  %v1375_v16 = vpack.c.bf16 %v326_v30, %v325_v14  ;;  %v212_v42 = vld [vmem:[%s1677_s16 + $0xe8] sm:$0xff]  ;;  %v213_v21 = vld [vmem:[%s1677_s16 + $0xf0] sm:$0xff] }
  0x64   : > { %427 = vmatmul.mubr.f32.gmra.mrb[14].mxu1 %v1881_v54  ;;  %1386 = vmatprep.subr.bf16.mxu1 %v1537_v3  ;;  %v312_v54 = vld [vmem:[%s2296_s1 + $0x308] sm:$0xff] }
  0x65   : > { %592 = vmatmul.mubr.f32.gmra.mrb[14].mxu0 %v1932_v6  ;;  %431 = vmatprep.mubr.f32.mxu1 %v1917_v2  ;;  %v1347_v55 = vpack.c.bf16 %v312_v54, %v311_v53 }
  0x66   : > { %1322 = vmatpush1.bf16.msra.mxu0 %v1321_v36  ;;  %596 = vmatprep.mubr.f32.mxu0 %v1977_v19  ;;  %v210_v36 = vld [vmem:[%s1677_s16 + $0xd8] sm:$0xff] }
  0x67   : > { %1323 = vmatprep.subr.bf16.mxu0 %v1537_v3  ;;  %1402 = vmatpush1.bf16.msra.mxu1 %v1723_v50  ;;  %v1327_v50 = vpack.c.bf16 %v298_v25, %v297_v23 }
  0x68   : > { %432 = vmatmul.mubr.f32.gmra.mrb[16].mxu1 %v1896_v8  ;;  %1387 = vmatprep.subr.bf16.mxu1 %v1537_v3 }
  0x69   : > { %597 = vmatmul.mubr.f32.gmra.mrb[16].mxu0 %v1947_v10  ;;  %436 = vmatprep.mubr.f32.mxu1 %v1932_v6 }
  0x6a   : > { %1325 = vmatpush1.bf16.msra.mxu0 %v1324_v44  ;;  %601 = vmatprep.mubr.f32.mxu0 %v1993_v22  ;;  %v214_v44 = vld [vmem:[%s1677_s16 + $0xf8] sm:$0xff] }
  0x6b   : > { %1326 = vmatprep.subr.bf16.mxu0 %v1537_v3  ;;  %1403 = vmatpush1.bf16.msra.mxu1 %v1740_v56  ;;  %v301_v56 = vld [vmem:[%s2296_s1 + $0x2b0] sm:$0xff] }
  0x6c   : > { %437 = vmatmul.mubr.f32.gmra.mrb[18].mxu1 %v1902_v63  ;;  %1388 = vmatprep.subr.bf16.mxu1 %v1537_v3  ;;  %v1333_v35 = vpack.c.bf16 %v302_v33, %v301_v56 }
  0x6d   : > { %602 = vmatmul.mubr.f32.gmra.mrb[18].mxu0 %v1962_v15  ;;  %441 = vmatprep.mubr.f32.mxu1 %v1947_v10 }
  0x6e   : > { %1328 = vmatpush1.bf16.msra.mxu0 %v1327_v50  ;;  %606 = vmatprep.mubr.f32.mxu0 %v2009_v26 }
  0x6f   : > { %1329 = vmatprep.subr.bf16.mxu0 %v1537_v3  ;;  %1404 = vmatpush1.bf16.msra.mxu1 %v1757_v62  ;;  %v303_v62 = vld [vmem:[%s2296_s1 + $0x2c0] sm:$0xff] }
  0x70   : > { %442 = vmatmul.mubr.f32.gmra.mrb[20].mxu1 %v1917_v2  ;;  %1389 = vmatprep.subr.bf16.mxu1 %v1537_v3  ;;  %v1336_v39 = vpack.c.bf16 %v304_v38, %v303_v62 }
  0x71   : > { %607 = vmatmul.mubr.f32.gmra.mrb[20].mxu0 %v1977_v19  ;;  %446 = vmatprep.mubr.f32.mxu1 %v1962_v15 }
  0x72   : > { %1331 = vmatpush1.bf16.msra.mxu0 %v1330_v31  ;;  %611 = vmatprep.mubr.f32.mxu0 %v2025_v32 }
  0x73   : > { %1332 = vmatprep.subr.bf16.mxu0 %v1537_v3  ;;  %1405 = vmatpush1.bf16.msra.mxu1 %v1774_v5  ;;  %v305_v5 = vld [vmem:[%s2296_s1 + $0x2d0] sm:$0xff] }
  0x74   : > { %447 = vmatmul.mubr.f32.gmra.mrb[22].mxu1 %v1932_v6  ;;  %1390 = vmatprep.subr.bf16.mxu1 %v1537_v3  ;;  %v1339_v46 = vpack.c.bf16 %v306_v45, %v305_v5 }
  0x75   : > { %612 = vmatmul.mubr.f32.gmra.mrb[22].mxu0 %v1993_v22  ;;  %451 = vmatprep.mubr.f32.mxu1 %v1977_v19 }
  0x76   : > { %1334 = vmatpush1.bf16.msra.mxu0 %v1333_v35  ;;  %616 = vmatprep.mubr.f32.mxu0 %v2041_v37 }
  0x77   : > { %1335 = vmatprep.subr.bf16.mxu0 %v1537_v3  ;;  %1406 = vmatpush1.bf16.msra.mxu1 %v1791_v13  ;;  %v307_v13 = vld [vmem:[%s2296_s1 + $0x2e0] sm:$0xff] }
  0x78   : > { %452 = vmatmul.mubr.f32.gmra.mrb[24].mxu1 %v1947_v10  ;;  %1391 = vmatprep.subr.bf16.mxu1 %v1537_v3  ;;  %v1342_v49 = vpack.c.bf16 %v308_v48, %v307_v13 }
  0x79   : > { %617 = vmatmul.mubr.f32.gmra.mrb[24].mxu0 %v2009_v26  ;;  %456 = vmatprep.mubr.f32.mxu1 %v1993_v22 }
  0x7a   : > { %1337 = vmatpush1.bf16.msra.mxu0 %v1336_v39  ;;  %621 = vmatprep.mubr.f32.mxu0 %v2057_v40 }
  0x7b   : > { %1338 = vmatprep.subr.bf16.mxu0 %v1537_v3  ;;  %1407 = vmatpush1.bf16.msra.mxu1 %v1808_v20  ;;  %v309_v20 = vld [vmem:[%s2296_s1 + $0x2f0] sm:$0xff] }
  0x7c   : > { %457 = vmatmul.mubr.f32.gmra.mrb[26].mxu1 %v1962_v15  ;;  %1392 = vmatprep.subr.bf16.mxu1 %v1537_v3 }
  0x7d   : > { %622 = vmatmul.mubr.f32.gmra.mrb[26].mxu0 %v2025_v32  ;;  %461 = vmatprep.mubr.f32.mxu1 %v2009_v26 }
  0x7e   : > { %1340 = vmatpush1.bf16.msra.mxu0 %v1339_v46  ;;  %626 = vmatprep.mubr.f32.mxu0 %v2073_v47 }
  0x7f   : > { %1341 = vmatprep.subr.bf16.mxu0 %v1537_v3  ;;  %1408 = vmatpush1.bf16.msra.mxu1 %v1825_v27  ;;  %v1345_v27 = vpack.c.bf16 %v310_v52, %v309_v20 }
  0x80   : > { %462 = vmatmul.mubr.f32.gmra.mrb[28].mxu1 %v1977_v19  ;;  %1393 = vmatprep.subr.bf16.mxu1 %v1537_v3 }
  0x81   : > { %627 = vmatmul.mubr.f32.gmra.mrb[28].mxu0 %v2041_v37  ;;  %466 = vmatprep.mubr.f32.mxu1 %v2025_v32 }
  0x82   : > { %1343 = vmatpush1.bf16.msra.mxu0 %v1342_v49  ;;  %631 = vmatprep.mubr.f32.mxu0 %v2089_v51 }
  0x83   : > { %1344 = vmatprep.subr.bf16.mxu0 %v1537_v3  ;;  %1409 = vmatpush1.bf16.msra.mxu1 %v1842_v34  ;;  %v314_v34 = vld [vmem:[%s2296_s1 + $0x318] sm:$0xff] }
  0x84   : > { %467 = vmatmul.mubr.f32.gmra.mrb[30].mxu1 %v1993_v22  ;;  %1394 = vmatprep.subr.bf16.mxu1 %v1537_v3  ;;  %v1351_v3 = vpack.c.bf16 %v314_v34, %v313_v57 }
  0x85   : > { %632 = vmatmul.mubr.f32.gmra.mrb[30].mxu0 %v2057_v40  ;;  %471 = vmatprep.mubr.f32.mxu1 %v2041_v37 }
  0x86   : > { %1346 = vmatpush1.bf16.msra.mxu0 %v1345_v27  ;;  %721 = vmatprep.mubr.f32.mxu0 %v1917_v2 }
  0x87   : > { %1348 = vmatprep.subr.bf16.mxu0 %v1347_v55  ;;  %1410 = vmatpush1.bf16.msra.mxu1 %v1859_v43  ;;  %v1355_v43 = vpack.c.bf16 %v316_v59, %v315_v58 }
  0x88   : > { %472 = vmatmul.mubr.f32.gmra.mrb[32].mxu1 %v2009_v26  ;;  %1411 = vmatprep.subr.bf16.mxu1 %v1347_v55 }
  0x89   : > { %722 = vmatmul.mubr.f32.vlgmr.msra.gmra.mrb[0].mxu0 %v1896_v8  ;;  %476 = vmatprep.mubr.f32.mxu1 %v2057_v40  ;;  %v318_v8 = vld [vmem:[%s2296_s1 + $0x338] sm:$0xff] }
  0x8a   : > { %1350 = vmatpush3.bf16.msra.mxu0 %v1347_v55  ;;  %726 = vmatprep.mubr.f32.mxu0 %v1932_v6  ;;  %v1359_v61 = vpack.c.bf16 %v318_v8, %v317_v60 }
  0x8b   : > { %1352 = vmatprep.subr.bf16.mxu0 %v1351_v3 }
  0x8c   : > { %477 = vmatmul.mubr.f32.gmra.mrb[34].mxu1 %v2025_v32 }
  0x8d   : > { %727 = vmatmul.mubr.f32.gmra.mrb[2].mxu0 %v1902_v63  ;;  %481 = vmatprep.mubr.f32.mxu1 %v2073_v47  ;;  %v2148_v63 = vld [vmem:[%s1677_s16 + $0xb0] sm:$0xff] }
  0x8e   : > { %731 = vmatprep.mubr.f32.mxu0 %v1947_v10  ;;  %1354 = vmatpush3.bf16.msra.mxu0 %v1351_v3 }
  0x8f   : > { %1356 = vmatprep.subr.bf16.mxu0 %v1355_v43 }
  0x90   : > { %482 = vmatmul.mubr.f32.gmra.mrb[36].mxu1 %v2041_v37 }
  0x91   : > { %732 = vmatmul.mubr.f32.gmra.mrb[4].mxu0 %v1917_v2  ;;  %486 = vmatprep.mubr.f32.mxu1 %v2089_v51  ;;  %v2161_v2 = vld [vmem:[%s1677_s16 + $0xb8] sm:$0xff] }
  0x92   : > { %736 = vmatprep.mubr.f32.mxu0 %v1962_v15  ;;  %1358 = vmatpush3.bf16.msra.mxu0 %v1355_v43 }
  0x93   : > { %1360 = vmatprep.subr.bf16.mxu0 %v1359_v61 }
  0x94   : > { %487 = vmatmul.mubr.f32.gmra.mrb[38].mxu1 %v2057_v40 }
  0x95   : > { %737 = vmatmul.mubr.f32.gmra.mrb[6].mxu0 %v1932_v6  ;;  %636 = vmatprep.mubr.f32.mxu1 %v2148_v63  ;;  %v2174_v6 = vld [vmem:[%s1677_s16 + $0xc0] sm:$0xff] }
  0x96   : > { %741 = vmatprep.mubr.f32.mxu0 %v1977_v19  ;;  %1362 = vmatpush3.bf16.msra.mxu0 %v1359_v61 }
  0x97   : > { %1364 = vmatprep.subr.bf16.mxu0 %v1363_v12 }
  0x98   : > { %637 = vmatmul.mubr.f32.vlgmr.msra.gmra.mrb[32].mxu1 %v2073_v47 }
  0x99   : > { %742 = vmatmul.mubr.f32.gmra.mrb[8].mxu0 %v1947_v10  ;;  %1419 = vmatpush3.bf16.msra.mxu1 %v1347_v55 }
  0x9a   : > { %641 = vmatprep.mubr.f32.mxu1 %v2161_v2  ;;  %746 = vmatprep.mubr.f32.mxu0 %v1993_v22 }
  0x9b   : > { %1412 = vmatprep.subr.bf16.mxu1 %v1351_v3  ;;  %1366 = vmatpush3.bf16.msra.mxu0 %v1363_v12 }
  0x9c   : > { %642 = vmatmul.mubr.f32.gmra.mrb[34].mxu1 %v2089_v51  ;;  %1368 = vmatprep.subr.bf16.mxu0 %v1367_v18 }
  0x9d   : > { %747 = vmatmul.mubr.f32.gmra.mrb[10].mxu0 %v1962_v15  ;;  %1420 = vmatpush3.bf16.msra.mxu1 %v1351_v3 }
  0x9e   : > { %646 = vmatprep.mubr.f32.mxu1 %v2174_v6  ;;  %751 = vmatprep.mubr.f32.mxu0 %v2009_v26 }
  0x9f   : > { %1413 = vmatprep.subr.bf16.mxu1 %v1355_v43  ;;  %1370 = vmatpush3.bf16.msra.mxu0 %v1367_v18 }
  0xa0   : > { %647 = vmatmul.mubr.f32.gmra.mrb[36].mxu1 %v2148_v63  ;;  %1372 = vmatprep.subr.bf16.mxu0 %v1371_v24 }
  0xa1   : > { %752 = vmatmul.mubr.f32.gmra.mrb[12].mxu0 %v1977_v19  ;;  %1421 = vmatpush3.bf16.msra.mxu1 %v1355_v43 }
  0xa2   : > { %651 = vmatprep.mubr.f32.mxu1 %v208_v11  ;;  %756 = vmatprep.mubr.f32.mxu0 %v2025_v32 }
  0xa3   : > { %1414 = vmatprep.subr.bf16.mxu1 %v1359_v61  ;;  %1374 = vmatpush3.bf16.msra.mxu0 %v1371_v24 }
  0xa4   : > { %652 = vmatmul.mubr.f32.gmra.mrb[38].mxu1 %v2161_v2  ;;  %1376 = vmatprep.subr.bf16.mxu0 %v1375_v16 }
  0xa5   : > { %757 = vmatmul.mubr.f32.gmra.mrb[14].mxu0 %v1993_v22  ;;  %1422 = vmatpush3.bf16.msra.mxu1 %v1359_v61 }
  0xa6   : > { %761 = vmatprep.mubr.f32.mxu0 %v2041_v37  ;;  %1415 = vmatprep.subr.bf16.mxu1 %v1363_v12 }
  0xa7   : > { %1176 = vmatprep.mubr.f32.mxu1 %v1977_v19  ;;  %1378 = vmatpush3.bf16.msra.mxu0 %v1375_v16  ;;  %v211_v19 = vld [vmem:[%s1677_s16 + $0xe0] sm:$0xff]  ;;  %s1487_s16 = smul.u32 160, %s2303_s9 }
  0xa9   : > { %762 = vmatmul.mubr.f32.gmra.mrb[16].mxu0 %v2009_v26  ;;  %1423 = vmatpush3.bf16.msra.mxu1 %v1363_v12  ;;  %s2255_s6 = scalar_lea.vmem %s2297_s2, %s1487_s16 }
  0xaa   : > { %766 = vmatprep.mubr.f32.mxu0 %v2057_v40  ;;  %1416 = vmatprep.subr.bf16.mxu1 %v1367_v18 }
  0xad   : > { %767 = vmatmul.mubr.f32.gmra.mrb[18].mxu0 %v2025_v32  ;;  %1424 = vmatpush3.bf16.msra.mxu1 %v1367_v18 }
  0xae   : > { %771 = vmatprep.mubr.f32.mxu0 %v2073_v47  ;;  %1417 = vmatprep.subr.bf16.mxu1 %v1371_v24 }
  0xb1   : > { %772 = vmatmul.mubr.f32.gmra.mrb[20].mxu0 %v2041_v37  ;;  %1425 = vmatpush3.bf16.msra.mxu1 %v1371_v24 }
  0xb2   : > { %776 = vmatprep.mubr.f32.mxu0 %v2089_v51  ;;  %1418 = vmatprep.subr.bf16.mxu1 %v1375_v16 }
  0xb5   : > { %777 = vmatmul.mubr.f32.gmra.mrb[22].mxu0 %v2057_v40  ;;  %1426 = vmatpush3.bf16.msra.mxu1 %v1375_v16 }
  0xb6   : > { %781 = vmatprep.mubr.f32.mxu0 %v2148_v63 }
  0xb8   : > { %1177 = vmatmul.mubr.f32.vlgmr.msra.gmra.mrb[40].mxu1 %v1993_v22 }
  0xb9   : > { %782 = vmatmul.mubr.f32.gmra.mrb[24].mxu0 %v2073_v47  ;;  %1179 = vmatprep.mubr.f32.mxu1 %v2009_v26 }
  0xba   : > { %786 = vmatprep.mubr.f32.mxu0 %v2161_v2 }
  0xbc   : > { %1180 = vmatmul.mubr.f32.gmra.mrb[42].mxu1 %v2025_v32 }
  0xbd   : > { %787 = vmatmul.mubr.f32.gmra.mrb[26].mxu0 %v2089_v51  ;;  %1182 = vmatprep.mubr.f32.mxu1 %v2041_v37 }
  0xbe   : > { %791 = vmatprep.mubr.f32.mxu0 %v2174_v6 }
  0xc0   : > { %1183 = vmatmul.mubr.f32.gmra.mrb[44].mxu1 %v2057_v40 }
  0xc1   : > { %792 = vmatmul.mubr.f32.gmra.mrb[28].mxu0 %v2148_v63  ;;  %1185 = vmatprep.mubr.f32.mxu1 %v2073_v47 }
  0xc2   : > { %796 = vmatprep.mubr.f32.mxu0 %v208_v11 }
  0xc4   : > { %1186 = vmatmul.mubr.f32.gmra.mrb[46].mxu1 %v2089_v51 }
  0xc5   : > { %797 = vmatmul.mubr.f32.gmra.mrb[30].mxu0 %v2161_v2  ;;  %1188 = vmatprep.mubr.f32.mxu1 %v2148_v63 }
  0xc6   : > { %801 = vmatprep.mubr.f32.mxu0 %v209_v17 }
  0xc8   : > { %1189 = vmatmul.mubr.f32.gmra.mrb[48].mxu1 %v2161_v2 }
  0xc9   : > { %802 = vmatmul.mubr.f32.gmra.mrb[32].mxu0 %v2174_v6  ;;  %1191 = vmatprep.mubr.f32.mxu1 %v2174_v6 }
  0xca   : > { %806 = vmatprep.mubr.f32.mxu0 %v210_v36 }
  0xcc   : > { %1192 = vmatmul.mubr.f32.gmra.mrb[50].mxu1 %v208_v11 }
  0xcd   : > { %807 = vmatmul.mubr.f32.gmra.mrb[34].mxu0 %v208_v11  ;;  %1194 = vmatprep.mubr.f32.mxu1 %v209_v17 }
  0xce   : > { %811 = vmatprep.mubr.f32.mxu0 %v211_v19 }
  0xd0   : > { %1195 = vmatmul.mubr.f32.gmra.mrb[52].mxu1 %v210_v36 }
  0xd1   : > { %812 = vmatmul.mubr.f32.gmra.mrb[36].mxu0 %v209_v17  ;;  %1197 = vmatprep.mubr.f32.mxu1 %v211_v19 }
  0xd2   : > { %816 = vmatprep.mubr.f32.mxu0 %v212_v42 }
  0xd4   : > { %1198 = vmatmul.mubr.f32.gmra.mrb[54].mxu1 %v212_v42 }
  0xd5   : > { %817 = vmatmul.mubr.f32.gmra.mrb[38].mxu0 %v210_v36  ;;  %1200 = vmatprep.mubr.f32.mxu1 %v213_v21 }
  0xd6   : > { %1173 = vmatprep.mubr.f32.mxu0 %v1947_v10 }
  0xd8   : > { %1201 = vmatmul.mubr.f32.gmra.mrb[56].mxu1 %v214_v44 }
  0xd9   : > { %1174 = vmatmul.mubr.f32.vlgmr.msra.gmra.mrb[40].mxu0 %v1962_v15 }
 0x11b   : > { %v393_v22 = vpop.f32.mrb[0].mxu1 }
 0x11c   : > { %v395_v23 = vpop.f32.mrb[1].mxu1 }
 0x11f   : > { %v398_v25 = vpop.f32.mrb[2].mxu1 }
 0x120   : > { %v400_v50 = vpop.f32.mrb[3].mxu1 }
 0x123   : > { %v403_v26 = vpop.f32.mrb[4].mxu1 }
 0x124   : > { %v405_v28 = vpop.f32.mrb[5].mxu1 }
 0x127   : > { %v408_v29 = vpop.f32.mrb[6].mxu1 }
 0x128   : > { %v410_v31 = vpop.f32.mrb[7].mxu1 }
 0x12b   : > { %v413_v32 = vpop.f32.mrb[8].mxu1 }
 0x12c   : > { %v415_v56 = vpop.f32.mrb[9].mxu1 }
 0x12f   : > { %v418_v33 = vpop.f32.mrb[10].mxu1 }
 0x130   : > { %v420_v35 = vpop.f32.mrb[11].mxu1 }
 0x133   : > { %v423_v37 = vpop.f32.mrb[12].mxu1 }
 0x134   : > { %v425_v62 = vpop.f32.mrb[13].mxu1 }
 0x137   : > { %v428_v38 = vpop.f32.mrb[14].mxu1 }
 0x138   : > { %v430_v39 = vpop.f32.mrb[15].mxu1 }
 0x13b   : > { %v433_v10 = vpop.f32.mrb[16].mxu1 }
 0x13c   : > { %v435_v40 = vpop.f32.mrb[17].mxu1 }
 0x13f   : > { %v438_v5 = vpop.f32.mrb[18].mxu1 }
 0x140   : > { %v440_v15 = vpop.f32.mrb[19].mxu1 }
 0x143   : > { %v443_v45 = vpop.f32.mrb[20].mxu1 }
 0x144   : > { %v445_v46 = vpop.f32.mrb[21].mxu1 }
 0x147   : > { %v448_v47 = vpop.f32.mrb[22].mxu1 }
 0x148   : > { %v450_v13 = vpop.f32.mrb[23].mxu1 }
 0x14b   : > { %v453_v48 = vpop.f32.mrb[24].mxu1 }
 0x14c   : > { %v455_v49 = vpop.f32.mrb[25].mxu1 }
 0x14f   : > { %v2233_v51 = vpop.f32.mrb[26].mxu1 }
 0x150   : > { %v460_v20 = vpop.f32.mrb[27].mxu1 }
 0x153   : > { %v2235_v52 = vpop.f32.mrb[28].mxu1 }
 0x154   : > { %v465_v53 = vpop.f32.mrb[29].mxu1 }
 0x157   : > { %v2237_v54 = vpop.f32.mrb[30].mxu1 }
 0x158   : > { %v470_v27 = vpop.f32.mrb[31].mxu1 }
 0x15c   : > { %v723_v55 = vpop.f32.mrb[0].mxu0 }
 0x15d   : > { %v2239_v57 = vadd.f32 %v723_v55, %v393_v22  ;;  %v725_v34 = vpop.f32.mrb[1].mxu0 }
 0x160   : > { %v728_v3 = vpop.f32.mrb[2].mxu0 }
 0x161   : > { %v2241_v58 = vadd.f32 %v728_v3, %v398_v25  ;;  %v730_v59 = vpop.f32.mrb[3].mxu0 }
 0x164   : > { %v733_v43 = vpop.f32.mrb[4].mxu0 }
 0x165   : > { %v1429_v60 = vadd.f32 %v733_v43, %v403_v26  ;;  %v735_v8 = vpop.f32.mrb[5].mxu0 }
 0x168   : > { %v738_v61 = vpop.f32.mrb[6].mxu0 }
 0x169   : > { %v1430_v63 = vadd.f32 %v738_v61, %v408_v29  ;;  %v740_v0 = vpop.f32.mrb[7].mxu0 }
 0x16b   : > { %v2243_v1 = vpop.f32.mrb[32].mxu1 }
 0x16c   : > { %v743_v12 = vpop.f32.mrb[8].mxu0  ;;  %v640_v2 = vpop.f32.mrb[33].mxu1 }
 0x16d   : > { %v1431_v41 = vadd.f32 %v743_v12, %v413_v32  ;;  %v745_v4 = vpop.f32.mrb[9].mxu0 }
 0x16f   : > { %v2245_v18 = vpop.f32.mrb[34].mxu1 }
 0x170   : > { %v748_v6 = vpop.f32.mrb[10].mxu0  ;;  %v645_v7 = vpop.f32.mrb[35].mxu1 }
 0x171   : > { %v1432_v9 = vadd.f32 %v748_v6, %v418_v33  ;;  %v750_v24 = vpop.f32.mrb[11].mxu0 }
 0x173   : > { %v2247_v11 = vpop.f32.mrb[36].mxu1 }
 0x174   : > { %v753_v14 = vpop.f32.mrb[12].mxu0  ;;  %v650_v30 = vpop.f32.mrb[37].mxu1 }
 0x175   : > { %v1433_v16 = vadd.f32 %v753_v14, %v423_v37  ;;  %v755_v17 = vpop.f32.mrb[13].mxu0 }
 0x177   : > { %v2249_v36 = vpop.f32.mrb[38].mxu1 }
 0x178   : > { %v758_v19 = vpop.f32.mrb[14].mxu0  ;;  %v655_v42 = vpop.f32.mrb[39].mxu1 }
 0x179   : > { %v1434_v21 = vadd.f32 %v758_v19, %v428_v38  ;;  %v760_v44 = vpop.f32.mrb[15].mxu0 }
 0x17c   : > { %v763_v22 = vpop.f32.mrb[16].mxu0 }
 0x17d   : > { %v1435_v23 = vadd.f32 %v763_v22, %v433_v10  ;;  %v765_v25 = vpop.f32.mrb[17].mxu0 }
 0x180   : > { %v768_v50 = vpop.f32.mrb[18].mxu0 }
 0x181   : > { %v1436_v26 = vadd.f32 %v768_v50, %v438_v5  ;;  %v770_v28 = vpop.f32.mrb[19].mxu0 }
 0x184   : > { %v773_v29 = vpop.f32.mrb[20].mxu0 }
 0x185   : > { %v1437_v31 = vadd.f32 %v773_v29, %v443_v45  ;;  %v775_v32 = vpop.f32.mrb[21].mxu0 }
 0x188   : > { %v778_v56 = vpop.f32.mrb[22].mxu0 }
 0x189   : > { %v1438_v33 = vadd.f32 %v778_v56, %v448_v47  ;;  %v780_v35 = vpop.f32.mrb[23].mxu0 }
 0x18b   : > { %v1178_v37 = vpop.f32.mrb[40].mxu1 }
 0x18c   : > { %v904_v62 = vadd.f32 %v1430_v63, %v1178_v37  ;;  %v783_v38 = vpop.f32.mrb[24].mxu0  ;;  %v898_v39 = vpop.f32.mrb[41].mxu1 }
 0x18d   : > { %v1439_v10 = vadd.f32 %v783_v38, %v453_v48  ;;  %v899_v40 = vadd.f32 %v1429_v60, %v898_v39  ;;  %v785_v5 = vpop.f32.mrb[25].mxu0 }
 0x18e   : > { %990 = vst [vmem:[%s2255_s6 + $0x18] sm:$0xff] %v904_v62 }
 0x18f   : > { %989 = vst [vmem:[%s2255_s6 + $0x10] sm:$0xff] %v899_v40  ;;  %v1181_v15 = vpop.f32.mrb[42].mxu1 }
 0x190   : > { %v914_v45 = vadd.f32 %v1432_v9, %v1181_v15  ;;  %v788_v46 = vpop.f32.mrb[26].mxu0  ;;  %v908_v47 = vpop.f32.mrb[43].mxu1 }
 0x191   : > { %v1440_v13 = vadd.f32 %v788_v46, %v2233_v51  ;;  %v909_v49 = vadd.f32 %v1431_v41, %v908_v47  ;;  %v790_v20 = vpop.f32.mrb[27].mxu0 }
 0x192   : > { %992 = vst [vmem:[%s2255_s6 + $0x28] sm:$0xff] %v914_v45 }
 0x193   : > { %991 = vst [vmem:[%s2255_s6 + $0x20] sm:$0xff] %v909_v49  ;;  %v1184_v53 = vpop.f32.mrb[44].mxu1 }
 0x194   : > { %v924_v27 = vadd.f32 %v1434_v21, %v1184_v53  ;;  %v793_v48 = vpop.f32.mrb[28].mxu0  ;;  %v918_v55 = vpop.f32.mrb[45].mxu1 }
 0x195   : > { %v1441_v34 = vadd.f32 %v793_v48, %v2235_v52  ;;  %v919_v3 = vadd.f32 %v1433_v16, %v918_v55  ;;  %v795_v59 = vpop.f32.mrb[29].mxu0 }
 0x196   : > { %994 = vst [vmem:[%s2255_s6 + $0x38] sm:$0xff] %v924_v27 }
 0x197   : > { %993 = vst [vmem:[%s2255_s6 + $0x30] sm:$0xff] %v919_v3  ;;  %v1187_v43 = vpop.f32.mrb[46].mxu1 }
 0x198   : > { %v934_v60 = vadd.f32 %v1436_v26, %v1187_v43  ;;  %v798_v51 = vpop.f32.mrb[30].mxu0  ;;  %v928_v8 = vpop.f32.mrb[47].mxu1 }
 0x199   : > { %v1442_v61 = vadd.f32 %v798_v51, %v2237_v54  ;;  %v929_v63 = vadd.f32 %v1435_v23, %v928_v8  ;;  %v800_v0 = vpop.f32.mrb[31].mxu0 }
 0x19a   : > { %996 = vst [vmem:[%s2255_s6 + $0x48] sm:$0xff] %v934_v60 }
 0x19b   : > { %995 = vst [vmem:[%s2255_s6 + $0x40] sm:$0xff] %v929_v63  ;;  %v1190_v12 = vpop.f32.mrb[48].mxu1 }
 0x19c   : > { %v944_v2 = vadd.f32 %v1438_v33, %v1190_v12  ;;  %v803_v52 = vpop.f32.mrb[32].mxu0  ;;  %v938_v41 = vpop.f32.mrb[49].mxu1 }
 0x19d   : > { %v1443_v4 = vadd.f32 %v803_v52, %v2243_v1  ;;  %v939_v6 = vadd.f32 %v1437_v31, %v938_v41  ;;  %v805_v7 = vpop.f32.mrb[33].mxu0 }
 0x19e   : > { %998 = vst [vmem:[%s2255_s6 + $0x58] sm:$0xff] %v944_v2 }
 0x19f   : > { %997 = vst [vmem:[%s2255_s6 + $0x50] sm:$0xff] %v939_v6  ;;  %v1193_v9 = vpop.f32.mrb[50].mxu1 }
 0x1a0   : > { %v954_v24 = vadd.f32 %v1440_v13, %v1193_v9  ;;  %v808_v54 = vpop.f32.mrb[34].mxu0  ;;  %v948_v14 = vpop.f32.mrb[51].mxu1 }
 0x1a1   : > { %v1444_v30 = vadd.f32 %v808_v54, %v2245_v18  ;;  %v949_v16 = vadd.f32 %v1439_v10, %v948_v14  ;;  %v810_v17 = vpop.f32.mrb[35].mxu0 }
 0x1a2   : > { %1000 = vst [vmem:[%s2255_s6 + $0x68] sm:$0xff] %v954_v24 }
 0x1a3   : > { %999 = vst [vmem:[%s2255_s6 + $0x60] sm:$0xff] %v949_v16  ;;  %v1196_v19 = vpop.f32.mrb[52].mxu1 }
 0x1a4   : > { %v964_v42 = vadd.f32 %v1442_v61, %v1196_v19  ;;  %v813_v1 = vpop.f32.mrb[36].mxu0  ;;  %v958_v21 = vpop.f32.mrb[53].mxu1 }
 0x1a5   : > { %v1445_v44 = vadd.f32 %v813_v1, %v2247_v11  ;;  %v959_v22 = vadd.f32 %v1441_v34, %v958_v21  ;;  %v815_v23 = vpop.f32.mrb[37].mxu0 }
 0x1a6   : > { %1002 = vst [vmem:[%s2255_s6 + $0x78] sm:$0xff] %v964_v42 }
 0x1a7   : > { %1001 = vst [vmem:[%s2255_s6 + $0x70] sm:$0xff] %v959_v22  ;;  %v1199_v25 = vpop.f32.mrb[54].mxu1 }
 0x1a8   : > { %v974_v50 = vadd.f32 %v1444_v30, %v1199_v25  ;;  %v818_v18 = vpop.f32.mrb[38].mxu0  ;;  %v968_v26 = vpop.f32.mrb[55].mxu1 }
 0x1a9   : > { %v1446_v28 = vadd.f32 %v818_v18, %v2249_v36  ;;  %v969_v29 = vadd.f32 %v1443_v4, %v968_v26  ;;  %v820_v31 = vpop.f32.mrb[39].mxu0 }
 0x1aa   : > { %1004 = vst [vmem:[%s2255_s6 + $0x88] sm:$0xff] %v974_v50 }
 0x1ab   : > { %1003 = vst [vmem:[%s2255_s6 + $0x80] sm:$0xff] %v969_v29  ;;  %v1202_v32 = vpop.f32.mrb[56].mxu1 }
 0x1ac   : > { %v984_v11 = vadd.f32 %v1446_v28, %v1202_v32  ;;  %v1175_v56 = vpop.f32.mrb[40].mxu0  ;;  %v978_v33 = vpop.f32.mrb[57].mxu1 }
 0x1ad   : > { %v894_v35 = vadd.f32 %v2241_v58, %v1175_v56  ;;  %v979_v37 = vadd.f32 %v1445_v44, %v978_v33  ;;  %v888_v62 = vpop.f32.mrb[41].mxu0 }
 0x1ae   : > { %1006 = vst [vmem:[%s2255_s6 + $0x98] sm:$0xff] %v984_v11  ;;  %v889_v38 = vadd.f32 %v2239_v57, %v888_v62 }
 0x1af   : > { %988 = vst [vmem:[%s2255_s6 + $0x8] sm:$0xff] %v894_v35  ;;  %1005 = vst [vmem:[%s2255_s6 + $0x90] sm:$0xff] %v979_v37 }
 0x1b0   : > { %987 = vst [vmem:[%s2255_s6] sm:$0xff] %v889_v38 }
 0x1b1 PF: > { %s12_s11 = sadd.s32 1, %s1535_s11   ;;  %s2298_s9 = smov %s1531_s10 }
 0x1b2   : > { %p9_p5 = scmp.ge.s32.totalorder %s12_s11, 4   ;;  %s2299_s10 = smov %s2301_s12 }
 0x1b4   :  { %11 = sbr.rel (!%p9_p5) target bundleno = 2 (0x2), region = 58 }

// kernel: gcm_forward_pallas.4
= control target key start
LH: loop header
LB: loop body
LE: loop exit
PB: predicated region body
PF: predicated region fallthrough
CT: control target
= control target key end

     0   :  { %s1858_s9 = smov 0   ;;  %s1860_s10 = smov 0   ;;  %s2846_s0 = inlined_call_operand.vmem [shape: f32[2,16,16,128], index: 0, kind: input, shape index: {}]   ;;  %s2847_s1 = inlined_call_operand.vmem [shape: f32[896,128], index: 1, kind: input, shape index: {}]   ;;  %s2848_s2 = inlined_call_operand.vmem [shape: f32[2,16,16,128], index: 2, kind: output, shape index: {}]  }
   0x1   :  { %s1862_s11 = smov 0  }
   0x2 LB: > { %s24_s12 = sadd.s32 1, %s1835_s10  ;;  %p1350_p0 = scmp.ge.s32.totalorder %s1839_s11, 1  ;;  %s1839_s11 = sphi %s1862_s11, %s12_s11   ;;  %s1835_s10 = sphi %s1860_s10, %s2850_s10   ;;  %s1831_s9 = sphi %s1858_s9, %s2849_s9  }
   0x3   : > { %p26_p1 = scmp.ge.s32.totalorder %s24_s12, 2  ;;  %p133_p2 = scmp.lt.s32.totalorder %s1839_s11, 3 }
   0x5   : > { %s2852_s12 = smov (%p26_p1, %s24_s12), 0  ;;  %p134_p3 = pnand %p1350_p0, %p133_p2 }
   0x6   : > { %v215_v0 = vld [vmem:[%s2847_s1] sm:$0xff] (!%p134_p3)  ;;  %v216_v1 = vld [vmem:[%s2847_s1 + $0x8] sm:$0xff] (!%p134_p3)  ;;  %v1841_v3 = vmov (!%p134_p3), 0.0|0.0   ;;  %v217_v6 = vld [vmem:[%s2847_s1 + $0x10] sm:$0xff] (!%p134_p3)  ;;  %v1842_v11 = vmov (!%p134_p3), 0.0   ;;  %p164_p4 = scmp.lt.s32.totalorder (!%p134_p3), %s1831_s9, 1 }
   0x7   : > { %137 = sbr.rel (%p134_p3) target bundleno = 510 (0x1fe), region = 28  ;;  %v247_v2 = vld [vmem:[%s2847_s1 + $0x100] sm:$0xff] (!%p134_p3)  ;;  %1487 = vmatprep.subr.bf16.mxu1 (!%p134_p3), %v1841_v3  ;;  %1535 = vmatprep.subr.bf16.mxu0 (!%p134_p3), %v1841_v3  ;;  %v1488_v4 = vpack.c.bf16 (!%p134_p3), %v216_v1, %v215_v0  ;;  %v248_v5 = vld [vmem:[%s2847_s1 + $0x108] sm:$0xff] (!%p134_p3)  ;;  %v218_v7 = vld [vmem:[%s2847_s1 + $0x18] sm:$0xff] (!%p134_p3) }
   0x8   : > { %v1898_v8 = vpack.c.bf16 (!%p134_p3), %v248_v5, %v247_v2  ;;  %v249_v9 = vld [vmem:[%s2847_s1 + $0x110] sm:$0xff] (!%p134_p3)  ;;  %v250_v10 = vld [vmem:[%s2847_s1 + $0x118] sm:$0xff] (!%p134_p3)  ;;  %391 = vmatprep.mubr.f32.mxu1 (!%p134_p3), %v1842_v11  ;;  %v1491_v12 = vpack.c.bf16 (!%p134_p3), %v218_v7, %v217_v6  ;;  %v219_v14 = vld [vmem:[%s2847_s1 + $0x20] sm:$0xff] (!%p134_p3) }
   0x9   : > { %1489 = vmatpush1.bf16.msra.mxu1 (!%p134_p3), %v1488_v4  ;;  %v1909_v13 = vpack.c.bf16 (!%p134_p3), %v250_v10, %v249_v9  ;;  %v220_v15 = vld [vmem:[%s2847_s1 + $0x28] sm:$0xff] (!%p134_p3)  ;;  %v251_v16 = vld [vmem:[%s2847_s1 + $0x120] sm:$0xff] (!%p134_p3)  ;;  %v221_v20 = vld [vmem:[%s2847_s1 + $0x30] sm:$0xff] (!%p134_p3) }
   0xa   : > { %1537 = vmatpush1.bf16.msra.mxu0 (!%p134_p3), %v1898_v8  ;;  %1490 = vmatprep.subr.bf16.mxu1 (!%p134_p3), %v1841_v3  ;;  %v252_v17 = vld [vmem:[%s2847_s1 + $0x128] sm:$0xff] (!%p134_p3)  ;;  %v1494_v18 = vpack.c.bf16 (!%p134_p3), %v220_v15, %v219_v14  ;;  %v222_v21 = vld [vmem:[%s2847_s1 + $0x38] sm:$0xff] (!%p134_p3)  ;;  %v253_v22 = vld [vmem:[%s2847_s1 + $0x130] sm:$0xff] (!%p134_p3) }
   0xb   : > { %1538 = vmatprep.subr.bf16.mxu0 (!%p134_p3), %v1841_v3  ;;  %v1927_v19 = vpack.c.bf16 (!%p134_p3), %v252_v17, %v251_v16  ;;  %v254_v23 = vld [vmem:[%s2847_s1 + $0x138] sm:$0xff] (!%p134_p3)  ;;  %v1497_v24 = vpack.c.bf16 (!%p134_p3), %v222_v21, %v221_v20  ;;  %v223_v26 = vld [vmem:[%s2847_s1 + $0x40] sm:$0xff] (!%p134_p3)  ;;  %v224_v27 = vld [vmem:[%s2847_s1 + $0x48] sm:$0xff] (!%p134_p3) }
   0xc   : > { %v1947_v25 = vpack.c.bf16 (!%p134_p3), %v254_v23, %v253_v22  ;;  %v255_v28 = vld [vmem:[%s2847_s1 + $0x140] sm:$0xff] (!%p134_p3)  ;;  %v256_v29 = vld [vmem:[%s2847_s1 + $0x148] sm:$0xff] (!%p134_p3)  ;;  %v1500_v30 = vpack.c.bf16 (!%p134_p3), %v224_v27, %v223_v26  ;;  %v225_v32 = vld [vmem:[%s2847_s1 + $0x50] sm:$0xff] (!%p134_p3) }
   0xd   : > { %1492 = vmatpush1.bf16.msra.mxu1 (!%p134_p3), %v1491_v12  ;;  %v1965_v31 = vpack.c.bf16 (!%p134_p3), %v256_v29, %v255_v28  ;;  %v226_v33 = vld [vmem:[%s2847_s1 + $0x58] sm:$0xff] (!%p134_p3)  ;;  %v257_v34 = vld [vmem:[%s2847_s1 + $0x150] sm:$0xff] (!%p134_p3)  ;;  %v227_v38 = vld [vmem:[%s2847_s1 + $0x60] sm:$0xff] (!%p134_p3) }
   0xe   : > { %1540 = vmatpush1.bf16.msra.mxu0 %v1909_v13  ;;  %1493 = vmatprep.subr.bf16.mxu1 %v1841_v3  ;;  %s2854_s9 = smov (!%p164_p4, %s1831_s9), 1  ;;  %v258_v35 = vld [vmem:[%s2847_s1 + $0x158] sm:$0xff]  ;;  %v1503_v36 = vpack.c.bf16 %v226_v33, %v225_v32  ;;  %v228_v39 = vld [vmem:[%s2847_s1 + $0x68] sm:$0xff]  ;;  %v259_v40 = vld [vmem:[%s2847_s1 + $0x160] sm:$0xff] }
   0xf   : > { %1541 = vmatprep.subr.bf16.mxu0 %v1841_v3  ;;  %s1357_s29 = sshll.u32 %s2854_s9, 8  ;;  %v1989_v37 = vpack.c.bf16 %v258_v35, %v257_v34  ;;  %v260_v41 = vld [vmem:[%s2847_s1 + $0x168] sm:$0xff]  ;;  %v1506_v43 = vpack.c.bf16 %v228_v39, %v227_v38  ;;  %v229_v45 = vld [vmem:[%s2847_s1 + $0x70] sm:$0xff]  ;;  %v230_v46 = vld [vmem:[%s2847_s1 + $0x78] sm:$0xff] }
  0x10   : > { %s1985_s16 = scalar_lea.vmem %s2846_s0, %s1357_s29  ;;  %v2010_v44 = vpack.c.bf16 %v260_v41, %v259_v40  ;;  %v261_v47 = vld [vmem:[%s2847_s1 + $0x170] sm:$0xff]  ;;  %v262_v48 = vld [vmem:[%s2847_s1 + $0x178] sm:$0xff]  ;;  %v1509_v49 = vpack.c.bf16 %v230_v46, %v229_v45  ;;  %v231_v51 = vld [vmem:[%s2847_s1 + $0x80] sm:$0xff]  ;;  %s2765_s18 = scalar_lea.vmem %s2848_s2, %s1357_s29 }
  0x11   : > { %1495 = vmatpush1.bf16.msra.mxu1 %v1494_v18  ;;  %v2005_v42 = vld [vmem:[%s1985_s16] sm:$0xff]  ;;  %v2027_v50 = vpack.c.bf16 %v262_v48, %v261_v47  ;;  %v232_v52 = vld [vmem:[%s2847_s1 + $0x88] sm:$0xff]  ;;  %v233_v57 = vld [vmem:[%s2847_s1 + $0x90] sm:$0xff] }
  0x12   : > { %1543 = vmatpush1.bf16.msra.mxu0 %v1927_v19  ;;  %1496 = vmatprep.subr.bf16.mxu1 %v1841_v3  ;;  %v263_v53 = vld [vmem:[%s2847_s1 + $0x180] sm:$0xff]  ;;  %v264_v54 = vld [vmem:[%s2847_s1 + $0x188] sm:$0xff]  ;;  %v1512_v55 = vpack.c.bf16 %v232_v52, %v231_v51  ;;  %v234_v58 = vld [vmem:[%s2847_s1 + $0x98] sm:$0xff] }
  0x13   : > { %1544 = vmatprep.subr.bf16.mxu0 %v1841_v3  ;;  %616 = vmatprep.mubr.f32.mxu0 %v2005_v42  ;;  %v2044_v56 = vpack.c.bf16 %v264_v54, %v263_v53  ;;  %v265_v59 = vld [vmem:[%s2847_s1 + $0x190] sm:$0xff]  ;;  %v266_v60 = vld [vmem:[%s2847_s1 + $0x198] sm:$0xff]  ;;  %v1515_v61 = vpack.c.bf16 %v234_v58, %v233_v57  ;;  %v235_v63 = vld [vmem:[%s2847_s1 + $0xa0] sm:$0xff] }
  0x14   : > { %v2061_v62 = vpack.c.bf16 %v266_v60, %v265_v59  ;;  %v236_v0 = vld [vmem:[%s2847_s1 + $0xa8] sm:$0xff]  ;;  %v267_v1 = vld [vmem:[%s2847_s1 + $0x1a0] sm:$0xff]  ;;  %v237_v6 = vld [vmem:[%s2847_s1 + $0xb0] sm:$0xff] }
  0x15   : > { %1498 = vmatpush1.bf16.msra.mxu1 %v1497_v24  ;;  %v268_v2 = vld [vmem:[%s2847_s1 + $0x1a8] sm:$0xff]  ;;  %v1518_v4 = vpack.c.bf16 %v236_v0, %v235_v63  ;;  %v238_v7 = vld [vmem:[%s2847_s1 + $0xb8] sm:$0xff]  ;;  %v269_v9 = vld [vmem:[%s2847_s1 + $0x1b0] sm:$0xff] }
  0x16   : > { %1546 = vmatpush1.bf16.msra.mxu0 %v1947_v25  ;;  %1499 = vmatprep.subr.bf16.mxu1 %v1841_v3  ;;  %v2078_v5 = vpack.c.bf16 %v268_v2, %v267_v1  ;;  %v270_v10 = vld [vmem:[%s2847_s1 + $0x1b8] sm:$0xff]  ;;  %v1521_v12 = vpack.c.bf16 %v238_v7, %v237_v6  ;;  %v239_v15 = vld [vmem:[%s2847_s1 + $0xc0] sm:$0xff]  ;;  %v240_v16 = vld [vmem:[%s2847_s1 + $0xc8] sm:$0xff] }
  0x17   : > { %1547 = vmatprep.subr.bf16.mxu0 %v1841_v3  ;;  %v2095_v14 = vpack.c.bf16 %v270_v10, %v269_v9  ;;  %v271_v17 = vld [vmem:[%s2847_s1 + $0x1c0] sm:$0xff]  ;;  %v272_v18 = vld [vmem:[%s2847_s1 + $0x1c8] sm:$0xff]  ;;  %v1524_v20 = vpack.c.bf16 %v240_v16, %v239_v15  ;;  %v241_v22 = vld [vmem:[%s2847_s1 + $0xd0] sm:$0xff] }
  0x18   : > { %v2112_v21 = vpack.c.bf16 %v272_v18, %v271_v17  ;;  %v242_v23 = vld [vmem:[%s2847_s1 + $0xd8] sm:$0xff]  ;;  %v273_v24 = vld [vmem:[%s2847_s1 + $0x1d0] sm:$0xff]  ;;  %v243_v29 = vld [vmem:[%s2847_s1 + $0xe0] sm:$0xff] }
  0x19   : > { %1501 = vmatpush1.bf16.msra.mxu1 %v1500_v30  ;;  %v274_v26 = vld [vmem:[%s2847_s1 + $0x1d8] sm:$0xff]  ;;  %v1527_v27 = vpack.c.bf16 %v242_v23, %v241_v22  ;;  %v244_v30 = vld [vmem:[%s2847_s1 + $0xe8] sm:$0xff]  ;;  %v275_v32 = vld [vmem:[%s2847_s1 + $0x1e0] sm:$0xff] }
  0x1a   : > { %1549 = vmatpush1.bf16.msra.mxu0 %v1965_v31  ;;  %1502 = vmatprep.subr.bf16.mxu1 %v1841_v3  ;;  %v2129_v28 = vpack.c.bf16 %v274_v26, %v273_v24  ;;  %v276_v33 = vld [vmem:[%s2847_s1 + $0x1e8] sm:$0xff]  ;;  %v1530_v34 = vpack.c.bf16 %v244_v30, %v243_v29  ;;  %v246_v38 = vld [vmem:[%s2847_s1 + $0xf8] sm:$0xff]  ;;  %v277_v39 = vld [vmem:[%s2847_s1 + $0x1f0] sm:$0xff] }
  0x1b   : > { %1550 = vmatprep.subr.bf16.mxu0 %v1841_v3  ;;  %v2146_v35 = vpack.c.bf16 %v276_v33, %v275_v32  ;;  %v278_v40 = vld [vmem:[%s2847_s1 + $0x1f8] sm:$0xff]  ;;  %v279_v45 = vld [vmem:[%s2847_s1 + $0x200] sm:$0xff]  ;;  %v280_v46 = vld [vmem:[%s2847_s1 + $0x208] sm:$0xff] }
  0x1c   : > { %v1584_v47 = vpack.c.bf16 %v280_v46, %v279_v45  ;;  %v281_v48 = vld [vmem:[%s2847_s1 + $0x210] sm:$0xff]  ;;  %v2183_v51 = vld [vmem:[%s1985_s16 + $0x8] sm:$0xff]  ;;  %v283_v54 = vld [vmem:[%s2847_s1 + $0x220] sm:$0xff] }
  0x1d   : > { %1504 = vmatpush1.bf16.msra.mxu1 %v1503_v36  ;;  %v245_v36 = vld [vmem:[%s2847_s1 + $0xf0] sm:$0xff]  ;;  %v2206_v57 = vld [vmem:[%s1985_s16 + $0x18] sm:$0xff]  ;;  %v2221_v60 = vld [vmem:[%s1985_s16 + $0x20] sm:$0xff] }
  0x1e   : > { %1552 = vmatpush1.bf16.msra.mxu0 %v1989_v37  ;;  %1505 = vmatprep.subr.bf16.mxu1 %v1841_v3  ;;  %v1533_v41 = vpack.c.bf16 %v246_v38, %v245_v36  ;;  %v2191_v53 = vld [vmem:[%s1985_s16 + $0x10] sm:$0xff]  ;;  %v286_v59 = vld [vmem:[%s2847_s1 + $0x238] sm:$0xff]  ;;  %v288_v63 = vld [vmem:[%s2847_s1 + $0x248] sm:$0xff] }
  0x1f   : > { %1553 = vmatprep.subr.bf16.mxu0 %v1841_v3  ;;  %v285_v58 = vld [vmem:[%s2847_s1 + $0x230] sm:$0xff]  ;;  %v2237_v0 = vld [vmem:[%s1985_s16 + $0x28] sm:$0xff]  ;;  %v290_v2 = vld [vmem:[%s2847_s1 + $0x258] sm:$0xff] }
  0x20   : > { %v289_v1 = vld [vmem:[%s2847_s1 + $0x250] sm:$0xff]  ;;  %v291_v6 = vld [vmem:[%s2847_s1 + $0x260] sm:$0xff]  ;;  %v292_v7 = vld [vmem:[%s2847_s1 + $0x268] sm:$0xff] }
  0x21   : > { %1507 = vmatpush1.bf16.msra.mxu1 %v1506_v43  ;;  %v2163_v43 = vpack.c.bf16 %v278_v40, %v277_v39  ;;  %v2269_v9 = vld [vmem:[%s1985_s16 + $0x38] sm:$0xff]  ;;  %v293_v10 = vld [vmem:[%s2847_s1 + $0x270] sm:$0xff]  ;;  %v2285_v15 = vld [vmem:[%s1985_s16 + $0x40] sm:$0xff] }
  0x22   : > { %1555 = vmatpush1.bf16.msra.mxu0 %v2010_v44  ;;  %1508 = vmatprep.subr.bf16.mxu1 %v1841_v3  ;;  %v295_v16 = vld [vmem:[%s2847_s1 + $0x280] sm:$0xff]  ;;  %v2301_v18 = vld [vmem:[%s1985_s16 + $0x48] sm:$0xff]  ;;  %v2317_v23 = vld [vmem:[%s1985_s16 + $0x50] sm:$0xff] }
  0x23   : > { %1556 = vmatprep.subr.bf16.mxu0 %v1841_v3  ;;  %v300_v24 = vld [vmem:[%s2847_s1 + $0x2a8] sm:$0xff]  ;;  %v302_v29 = vld [vmem:[%s2847_s1 + $0x2b8] sm:$0xff]  ;;  %v2349_v32 = vld [vmem:[%s1985_s16 + $0x60] sm:$0xff] }
  0x24   : > { %v304_v33 = vld [vmem:[%s2847_s1 + $0x2c8] sm:$0xff]  ;;  %v306_v38 = vld [vmem:[%s2847_s1 + $0x2d8] sm:$0xff]  ;;  %v2381_v40 = vld [vmem:[%s1985_s16 + $0x70] sm:$0xff] }
  0x25   : > { %1510 = vmatpush1.bf16.msra.mxu1 %v1509_v49  ;;  %v282_v49 = vld [vmem:[%s2847_s1 + $0x218] sm:$0xff]  ;;  %v2365_v36 = vld [vmem:[%s1985_s16 + $0x68] sm:$0xff] }
  0x26   : > { %1558 = vmatpush1.bf16.msra.mxu0 %v2027_v50  ;;  %1511 = vmatprep.subr.bf16.mxu1 %v1841_v3  ;;  %v1587_v52 = vpack.c.bf16 %v282_v49, %v281_v48  ;;  %v2397_v46 = vld [vmem:[%s1985_s16 + $0x78] sm:$0xff]  ;;  %v311_v48 = vld [vmem:[%s2847_s1 + $0x300] sm:$0xff]  ;;  %v312_v49 = vld [vmem:[%s2847_s1 + $0x308] sm:$0xff] }
  0x27   : > { %1559 = vmatprep.subr.bf16.mxu0 %v1841_v3 }
  0x29   : > { %1513 = vmatpush1.bf16.msra.mxu1 %v1512_v55  ;;  %v284_v55 = vld [vmem:[%s2847_s1 + $0x228] sm:$0xff] }
  0x2a   : > { %1561 = vmatpush1.bf16.msra.mxu0 %v2044_v56  ;;  %1514 = vmatprep.subr.bf16.mxu1 %v1841_v3 }
  0x2b   : > { %1562 = vmatprep.subr.bf16.mxu0 %v1841_v3 }
  0x2d   : > { %1516 = vmatpush1.bf16.msra.mxu1 %v1515_v61  ;;  %v287_v61 = vld [vmem:[%s2847_s1 + $0x240] sm:$0xff] }
  0x2e   : > { %1564 = vmatpush1.bf16.msra.mxu0 %v2061_v62  ;;  %1517 = vmatprep.subr.bf16.mxu1 %v1841_v3 }
  0x2f   : > { %1565 = vmatprep.subr.bf16.mxu0 %v1841_v3 }
  0x31   : > { %1519 = vmatpush1.bf16.msra.mxu1 %v1518_v4  ;;  %v2253_v4 = vld [vmem:[%s1985_s16 + $0x30] sm:$0xff] }
  0x32   : > { %1567 = vmatpush1.bf16.msra.mxu0 %v2078_v5  ;;  %1520 = vmatprep.subr.bf16.mxu1 %v1841_v3 }
  0x33   : > { %1568 = vmatprep.subr.bf16.mxu0 %v1841_v3 }
  0x35   : > { %1522 = vmatpush1.bf16.msra.mxu1 %v1521_v12  ;;  %v294_v12 = vld [vmem:[%s2847_s1 + $0x278] sm:$0xff] }
  0x36   : > { %1570 = vmatpush1.bf16.msra.mxu0 %v2095_v14  ;;  %1523 = vmatprep.subr.bf16.mxu1 %v1841_v3 }
  0x37   : > { %1571 = vmatprep.subr.bf16.mxu0 %v1841_v3 }
  0x39   : > { %1525 = vmatpush1.bf16.msra.mxu1 %v1524_v20  ;;  %v298_v20 = vld [vmem:[%s2847_s1 + $0x298] sm:$0xff] }
  0x3a   : > { %1573 = vmatpush1.bf16.msra.mxu0 %v2112_v21  ;;  %1526 = vmatprep.subr.bf16.mxu1 %v1841_v3 }
  0x3b   : > { %1574 = vmatprep.subr.bf16.mxu0 %v1841_v3 }
  0x3d   : > { %1528 = vmatpush1.bf16.msra.mxu1 %v1527_v27  ;;  %v2333_v27 = vld [vmem:[%s1985_s16 + $0x58] sm:$0xff] }
  0x3e   : > { %1576 = vmatpush1.bf16.msra.mxu0 %v2129_v28  ;;  %1529 = vmatprep.subr.bf16.mxu1 %v1841_v3 }
  0x3f   : > { %1577 = vmatprep.subr.bf16.mxu0 %v1841_v3 }
  0x41   : > { %1531 = vmatpush1.bf16.msra.mxu1 %v1530_v34 }
  0x42   : > { %1579 = vmatpush1.bf16.msra.mxu0 %v2146_v35  ;;  %1532 = vmatprep.subr.bf16.mxu1 %v1841_v3 }
  0x43   : > { %1580 = vmatprep.subr.bf16.mxu0 %v1841_v3 }
  0x45   : > { %1534 = vmatpush1.bf16.msra.mxu1 %v1533_v41  ;;  %v308_v41 = vld [vmem:[%s2847_s1 + $0x2e8] sm:$0xff] }
  0x46   : > { %1582 = vmatpush1.bf16.msra.mxu0 %v2163_v43  ;;  %1663 = vmatprep.subr.bf16.mxu1 %v1841_v3 }
  0x47   : > { %1583 = vmatprep.subr.bf16.mxu0 %v1841_v3 }
  0x48   : > { %392 = vmatmul.mubr.f32.vlgmr.msra.gmra.mrb[0].mxu1 %v1842_v11 }
  0x49   : > { %617 = vmatmul.mubr.f32.vlgmr.msra.gmra.mrb[0].mxu0 %v1842_v11  ;;  %1679 = vmatpush1.bf16.msra.mxu1 %v1898_v8  ;;  %v1590_v8 = vpack.c.bf16 %v284_v55, %v283_v54  ;;  %v2431_v54 = vld [vmem:[%s1985_s16 + $0x88] sm:$0xff] }
  0x4a   : > { %1585 = vmatpush1.bf16.msra.mxu0 %v1584_v47  ;;  %396 = vmatprep.mubr.f32.mxu1 %v1842_v11  ;;  %v310_v47 = vld [vmem:[%s2847_s1 + $0x2f8] sm:$0xff]  ;;  %v2461_v55 = vld [vmem:[%s1985_s16 + $0xa8] sm:$0xff] }
  0x4b   : > { %621 = vmatprep.mubr.f32.mxu0 %v2183_v51  ;;  %1586 = vmatprep.subr.bf16.mxu0 %v1841_v3 }
  0x4c   : > { %397 = vmatmul.mubr.f32.gmra.mrb[2].mxu1 %v1842_v11  ;;  %1664 = vmatprep.subr.bf16.mxu1 %v1841_v3 }
  0x4d   : > { %622 = vmatmul.mubr.f32.gmra.mrb[2].mxu0 %v1842_v11  ;;  %401 = vmatprep.mubr.f32.mxu1 %v1842_v11 }
  0x4e   : > { %626 = vmatprep.mubr.f32.mxu0 %v2191_v53  ;;  %1588 = vmatpush1.bf16.msra.mxu0 %v1587_v52  ;;  %v2425_v52 = vpack.c.bf16 %v312_v49, %v311_v48 }
  0x4f   : > { %1680 = vmatpush1.bf16.msra.mxu1 %v1909_v13  ;;  %1589 = vmatprep.subr.bf16.mxu0 %v1841_v3  ;;  %v1593_v13 = vpack.c.bf16 %v286_v59, %v285_v58  ;;  %v2475_v58 = vld [vmem:[%s1985_s16 + $0xb8] sm:$0xff]  ;;  %v2512_v59 = vld [vmem:[%s1985_s16 + $0xd0] sm:$0xff] }
  0x50   : > { %402 = vmatmul.mubr.f32.gmra.mrb[4].mxu1 %v1842_v11  ;;  %1665 = vmatprep.subr.bf16.mxu1 %v1841_v3 }
  0x51   : > { %627 = vmatmul.mubr.f32.gmra.mrb[4].mxu0 %v2005_v42  ;;  %406 = vmatprep.mubr.f32.mxu1 %v1842_v11 }
  0x52   : > { %631 = vmatprep.mubr.f32.mxu0 %v2206_v57  ;;  %1591 = vmatpush1.bf16.msra.mxu0 %v1590_v8  ;;  %v2468_v8 = vld [vmem:[%s1985_s16 + $0xb0] sm:$0xff] }
  0x53   : > { %1681 = vmatpush1.bf16.msra.mxu1 %v1927_v19  ;;  %1592 = vmatprep.subr.bf16.mxu0 %v1841_v3  ;;  %v1596_v19 = vpack.c.bf16 %v288_v63, %v287_v61  ;;  %v314_v61 = vld [vmem:[%s2847_s1 + $0x318] sm:$0xff] }
  0x54   : > { %407 = vmatmul.mubr.f32.gmra.mrb[6].mxu1 %v1842_v11  ;;  %1666 = vmatprep.subr.bf16.mxu1 %v1841_v3 }
  0x55   : > { %632 = vmatmul.mubr.f32.gmra.mrb[6].mxu0 %v2183_v51  ;;  %411 = vmatprep.mubr.f32.mxu1 %v2005_v42 }
  0x56   : > { %636 = vmatprep.mubr.f32.mxu0 %v2221_v60  ;;  %1594 = vmatpush1.bf16.msra.mxu0 %v1593_v13  ;;  %v2519_v13 = vld [vmem:[%s1985_s16 + $0xd8] sm:$0xff] }
  0x57   : > { %1595 = vmatprep.subr.bf16.mxu0 %v1841_v3  ;;  %1682 = vmatpush1.bf16.msra.mxu1 %v1947_v25  ;;  %v1599_v25 = vpack.c.bf16 %v290_v2, %v289_v1  ;;  %v317_v2 = vld [vmem:[%s2847_s1 + $0x330] sm:$0xff] }
  0x58   : > { %412 = vmatmul.mubr.f32.gmra.mrb[8].mxu1 %v1842_v11  ;;  %1667 = vmatprep.subr.bf16.mxu1 %v1841_v3 }
  0x59   : > { %637 = vmatmul.mubr.f32.gmra.mrb[8].mxu0 %v2191_v53  ;;  %416 = vmatprep.mubr.f32.mxu1 %v2183_v51 }
  0x5a   : > { %641 = vmatprep.mubr.f32.mxu0 %v2237_v0  ;;  %1597 = vmatpush1.bf16.msra.mxu0 %v1596_v19  ;;  %v315_v19 = vld [vmem:[%s2847_s1 + $0x320] sm:$0xff] }
  0x5b   : > { %1598 = vmatprep.subr.bf16.mxu0 %v1841_v3  ;;  %1683 = vmatpush1.bf16.msra.mxu1 %v1965_v31  ;;  %v1602_v31 = vpack.c.bf16 %v292_v7, %v291_v6  ;;  %v319_v7 = vld [vmem:[%s2847_s1 + $0x340] sm:$0xff] }
  0x5c   : > { %417 = vmatmul.mubr.f32.gmra.mrb[10].mxu1 %v1842_v11  ;;  %1668 = vmatprep.subr.bf16.mxu1 %v1841_v3 }
  0x5d   : > { %642 = vmatmul.mubr.f32.gmra.mrb[10].mxu0 %v2206_v57  ;;  %421 = vmatprep.mubr.f32.mxu1 %v2191_v53 }
  0x5e   : > { %646 = vmatprep.mubr.f32.mxu0 %v2253_v4  ;;  %1600 = vmatpush1.bf16.msra.mxu0 %v1599_v25  ;;  %v318_v25 = vld [vmem:[%s2847_s1 + $0x338] sm:$0xff] }
  0x5f   : > { %1601 = vmatprep.subr.bf16.mxu0 %v1841_v3  ;;  %1684 = vmatpush1.bf16.msra.mxu1 %v1989_v37  ;;  %v1605_v37 = vpack.c.bf16 %v294_v12, %v293_v10  ;;  %v1643_v6 = vpack.c.bf16 %v318_v25, %v317_v2  ;;  %v2567_v10 = vld [vmem:[%s1985_s16 + $0xe0] sm:$0xff] }
  0x60   : > { %422 = vmatmul.mubr.f32.gmra.mrb[12].mxu1 %v2005_v42  ;;  %1669 = vmatprep.subr.bf16.mxu1 %v1841_v3  ;;  %v296_v42 = vld [vmem:[%s2847_s1 + $0x288] sm:$0xff] }
  0x61   : > { %647 = vmatmul.mubr.f32.gmra.mrb[12].mxu0 %v2221_v60  ;;  %426 = vmatprep.mubr.f32.mxu1 %v2206_v57  ;;  %v1608_v17 = vpack.c.bf16 %v296_v42, %v295_v16  ;;  %v322_v16 = vld [vmem:[%s2847_s1 + $0x358] sm:$0xff]  ;;  %v2580_v42 = vld [vmem:[%s1985_s16 + $0xe8] sm:$0xff] }
  0x62   : > { %651 = vmatprep.mubr.f32.mxu0 %v2269_v9  ;;  %1603 = vmatpush1.bf16.msra.mxu0 %v1602_v31  ;;  %v320_v31 = vld [vmem:[%s2847_s1 + $0x348] sm:$0xff] }
  0x63   : > { %1604 = vmatprep.subr.bf16.mxu0 %v1841_v3  ;;  %1685 = vmatpush1.bf16.msra.mxu1 %v2010_v44  ;;  %v297_v44 = vld [vmem:[%s2847_s1 + $0x290] sm:$0xff]  ;;  %v1647_v12 = vpack.c.bf16 %v320_v31, %v319_v7 }
  0x64   : > { %427 = vmatmul.mubr.f32.gmra.mrb[14].mxu1 %v2183_v51  ;;  %1670 = vmatprep.subr.bf16.mxu1 %v1841_v3  ;;  %v1611_v22 = vpack.c.bf16 %v298_v20, %v297_v44  ;;  %v2419_v51 = vld [vmem:[%s1985_s16 + $0x80] sm:$0xff]  ;;  %v324_v20 = vld [vmem:[%s2847_s1 + $0x368] sm:$0xff] }
  0x65   : > { %652 = vmatmul.mubr.f32.gmra.mrb[14].mxu0 %v2237_v0  ;;  %431 = vmatprep.mubr.f32.mxu1 %v2221_v60  ;;  %v323_v44 = vld [vmem:[%s2847_s1 + $0x360] sm:$0xff] }
  0x66   : > { %656 = vmatprep.mubr.f32.mxu0 %v2285_v15  ;;  %1606 = vmatpush1.bf16.msra.mxu0 %v1605_v37  ;;  %v321_v37 = vld [vmem:[%s2847_s1 + $0x350] sm:$0xff] }
  0x67   : > { %1607 = vmatprep.subr.bf16.mxu0 %v1841_v3  ;;  %1686 = vmatpush1.bf16.msra.mxu1 %v2027_v50  ;;  %v299_v50 = vld [vmem:[%s2847_s1 + $0x2a0] sm:$0xff] }
  0x68   : > { %432 = vmatmul.mubr.f32.gmra.mrb[16].mxu1 %v2191_v53  ;;  %1671 = vmatprep.subr.bf16.mxu1 %v1841_v3  ;;  %v1614_v26 = vpack.c.bf16 %v300_v24, %v299_v50  ;;  %v1655_v50 = vpack.c.bf16 %v324_v20, %v323_v44  ;;  %v325_v24 = vld [vmem:[%s2847_s1 + $0x370] sm:$0xff] }
  0x69   : > { %657 = vmatmul.mubr.f32.gmra.mrb[16].mxu0 %v2253_v4  ;;  %436 = vmatprep.mubr.f32.mxu1 %v2237_v0 }
  0x6a   : > { %661 = vmatprep.mubr.f32.mxu0 %v2301_v18  ;;  %1609 = vmatpush1.bf16.msra.mxu0 %v1608_v17  ;;  %v1651_v17 = vpack.c.bf16 %v322_v16, %v321_v37 }
  0x6b   : > { %1610 = vmatprep.subr.bf16.mxu0 %v1841_v3  ;;  %1687 = vmatpush1.bf16.msra.mxu1 %v2044_v56  ;;  %v301_v56 = vld [vmem:[%s2847_s1 + $0x2b0] sm:$0xff] }
  0x6c   : > { %437 = vmatmul.mubr.f32.gmra.mrb[18].mxu1 %v2206_v57  ;;  %1672 = vmatprep.subr.bf16.mxu1 %v1841_v3  ;;  %v1617_v30 = vpack.c.bf16 %v302_v29, %v301_v56  ;;  %v2606_v56 = vld [vmem:[%s1985_s16 + $0xf8] sm:$0xff] }
  0x6d   : > { %662 = vmatmul.mubr.f32.gmra.mrb[18].mxu0 %v2269_v9  ;;  %441 = vmatprep.mubr.f32.mxu1 %v2253_v4 }
  0x6e   : > { %666 = vmatprep.mubr.f32.mxu0 %v2317_v23  ;;  %1612 = vmatpush1.bf16.msra.mxu0 %v1611_v22  ;;  %v2593_v22 = vld [vmem:[%s1985_s16 + $0xf0] sm:$0xff] }
  0x6f   : > { %1613 = vmatprep.subr.bf16.mxu0 %v1841_v3  ;;  %1688 = vmatpush1.bf16.msra.mxu1 %v2061_v62  ;;  %v303_v62 = vld [vmem:[%s2847_s1 + $0x2c0] sm:$0xff] }
  0x70   : > { %442 = vmatmul.mubr.f32.gmra.mrb[20].mxu1 %v2221_v60  ;;  %1673 = vmatprep.subr.bf16.mxu1 %v1841_v3  ;;  %v1620_v34 = vpack.c.bf16 %v304_v33, %v303_v62 }
  0x71   : > { %667 = vmatmul.mubr.f32.gmra.mrb[20].mxu0 %v2285_v15  ;;  %446 = vmatprep.mubr.f32.mxu1 %v2269_v9 }
  0x72   : > { %671 = vmatprep.mubr.f32.mxu0 %v2333_v27  ;;  %1615 = vmatpush1.bf16.msra.mxu0 %v1614_v26  ;;  %v326_v26 = vld [vmem:[%s2847_s1 + $0x378] sm:$0xff] }
  0x73   : > { %1616 = vmatprep.subr.bf16.mxu0 %v1841_v3  ;;  %1689 = vmatpush1.bf16.msra.mxu1 %v2078_v5  ;;  %v305_v5 = vld [vmem:[%s2847_s1 + $0x2d0] sm:$0xff]  ;;  %v1659_v29 = vpack.c.bf16 %v326_v26, %v325_v24 }
  0x74   : > { %447 = vmatmul.mubr.f32.gmra.mrb[22].mxu1 %v2237_v0  ;;  %1674 = vmatprep.subr.bf16.mxu1 %v1841_v3  ;;  %v1623_v39 = vpack.c.bf16 %v306_v38, %v305_v5 }
  0x75   : > { %672 = vmatmul.mubr.f32.gmra.mrb[22].mxu0 %v2301_v18  ;;  %451 = vmatprep.mubr.f32.mxu1 %v2285_v15 }
  0x76   : > { %676 = vmatprep.mubr.f32.mxu0 %v2349_v32  ;;  %1618 = vmatpush1.bf16.msra.mxu0 %v1617_v30 }
  0x77   : > { %1619 = vmatprep.subr.bf16.mxu0 %v1841_v3  ;;  %1690 = vmatpush1.bf16.msra.mxu1 %v2095_v14  ;;  %v307_v14 = vld [vmem:[%s2847_s1 + $0x2e0] sm:$0xff] }
  0x78   : > { %452 = vmatmul.mubr.f32.gmra.mrb[24].mxu1 %v2253_v4  ;;  %1675 = vmatprep.subr.bf16.mxu1 %v1841_v3  ;;  %v1626_v45 = vpack.c.bf16 %v308_v41, %v307_v14 }
  0x79   : > { %677 = vmatmul.mubr.f32.gmra.mrb[24].mxu0 %v2317_v23  ;;  %456 = vmatprep.mubr.f32.mxu1 %v2301_v18 }
  0x7a   : > { %681 = vmatprep.mubr.f32.mxu0 %v2365_v36  ;;  %1621 = vmatpush1.bf16.msra.mxu0 %v1620_v34 }
  0x7b   : > { %1622 = vmatprep.subr.bf16.mxu0 %v1841_v3  ;;  %1691 = vmatpush1.bf16.msra.mxu1 %v2112_v21  ;;  %v309_v21 = vld [vmem:[%s2847_s1 + $0x2f0] sm:$0xff] }
  0x7c   : > { %457 = vmatmul.mubr.f32.gmra.mrb[26].mxu1 %v2269_v9  ;;  %1676 = vmatprep.subr.bf16.mxu1 %v1841_v3 }
  0x7d   : > { %682 = vmatmul.mubr.f32.gmra.mrb[26].mxu0 %v2333_v27  ;;  %461 = vmatprep.mubr.f32.mxu1 %v2317_v23 }
  0x7e   : > { %686 = vmatprep.mubr.f32.mxu0 %v2381_v40  ;;  %1624 = vmatpush1.bf16.msra.mxu0 %v1623_v39 }
  0x7f   : > { %1625 = vmatprep.subr.bf16.mxu0 %v1841_v3  ;;  %1692 = vmatpush1.bf16.msra.mxu1 %v2129_v28  ;;  %v1629_v28 = vpack.c.bf16 %v310_v47, %v309_v21 }
  0x80   : > { %462 = vmatmul.mubr.f32.gmra.mrb[28].mxu1 %v2285_v15  ;;  %1677 = vmatprep.subr.bf16.mxu1 %v1841_v3 }
  0x81   : > { %687 = vmatmul.mubr.f32.gmra.mrb[28].mxu0 %v2349_v32  ;;  %466 = vmatprep.mubr.f32.mxu1 %v2333_v27 }
  0x82   : > { %691 = vmatprep.mubr.f32.mxu0 %v2397_v46  ;;  %1627 = vmatpush1.bf16.msra.mxu0 %v1626_v45 }
  0x83   : > { %1628 = vmatprep.subr.bf16.mxu0 %v1841_v3  ;;  %1693 = vmatpush1.bf16.msra.mxu1 %v2146_v35  ;;  %v2447_v35 = vld [vmem:[%s1985_s16 + $0x98] sm:$0xff] }
  0x84   : > { %467 = vmatmul.mubr.f32.gmra.mrb[30].mxu1 %v2301_v18  ;;  %1678 = vmatprep.subr.bf16.mxu1 %v1841_v3  ;;  %v2440_v3 = vld [vmem:[%s1985_s16 + $0x90] sm:$0xff] }
  0x85   : > { %692 = vmatmul.mubr.f32.gmra.mrb[30].mxu0 %v2365_v36  ;;  %471 = vmatprep.mubr.f32.mxu1 %v2349_v32 }
  0x86   : > { %696 = vmatprep.mubr.f32.mxu0 %v2419_v51  ;;  %1630 = vmatpush1.bf16.msra.mxu0 %v1629_v28 }
  0x87   : > { %1694 = vmatpush1.bf16.msra.mxu1 %v2163_v43  ;;  %v2454_v43 = vld [vmem:[%s1985_s16 + $0xa0] sm:$0xff] }
  0x88   : > { %472 = vmatmul.mubr.f32.gmra.mrb[32].mxu1 %v2317_v23  ;;  %1632 = vmatprep.subr.bf16.mxu1 %v2425_v52 }
  0x89   : > { %697 = vmatmul.mubr.f32.gmra.mrb[32].mxu0 %v2381_v40  ;;  %476 = vmatprep.mubr.f32.mxu1 %v2365_v36 }
  0x8a   : > { %701 = vmatprep.mubr.f32.mxu0 %v2431_v54 }
  0x8c   : > { %477 = vmatmul.mubr.f32.gmra.mrb[34].mxu1 %v2333_v27 }
  0x8d   : > { %702 = vmatmul.mubr.f32.gmra.mrb[34].mxu0 %v2397_v46  ;;  %481 = vmatprep.mubr.f32.mxu1 %v2381_v40 }
  0x8e   : > { %706 = vmatprep.mubr.f32.mxu0 %v2440_v3 }
  0x90   : > { %482 = vmatmul.mubr.f32.gmra.mrb[36].mxu1 %v2349_v32 }
  0x91   : > { %707 = vmatmul.mubr.f32.gmra.mrb[36].mxu0 %v2419_v51  ;;  %486 = vmatprep.mubr.f32.mxu1 %v2397_v46 }
  0x92   : > { %711 = vmatprep.mubr.f32.mxu0 %v2447_v35 }
  0x94   : > { %487 = vmatmul.mubr.f32.gmra.mrb[38].mxu1 %v2365_v36 }
  0x95   : > { %712 = vmatmul.mubr.f32.gmra.mrb[38].mxu0 %v2431_v54  ;;  %491 = vmatprep.mubr.f32.mxu1 %v2419_v51 }
  0x96   : > { %716 = vmatprep.mubr.f32.mxu0 %v2454_v43 }
  0x98   : > { %492 = vmatmul.mubr.f32.gmra.mrb[40].mxu1 %v2381_v40 }
  0x99   : > { %717 = vmatmul.mubr.f32.gmra.mrb[40].mxu0 %v2440_v3  ;;  %496 = vmatprep.mubr.f32.mxu1 %v2431_v54 }
  0x9a   : > { %721 = vmatprep.mubr.f32.mxu0 %v2461_v55 }
  0x9c   : > { %497 = vmatmul.mubr.f32.gmra.mrb[42].mxu1 %v2397_v46 }
  0x9d   : > { %722 = vmatmul.mubr.f32.gmra.mrb[42].mxu0 %v2447_v35  ;;  %501 = vmatprep.mubr.f32.mxu1 %v2440_v3 }
  0x9e   : > { %726 = vmatprep.mubr.f32.mxu0 %v2468_v8 }
  0xa0   : > { %502 = vmatmul.mubr.f32.gmra.mrb[44].mxu1 %v2419_v51 }
  0xa1   : > { %727 = vmatmul.mubr.f32.gmra.mrb[44].mxu0 %v2454_v43  ;;  %506 = vmatprep.mubr.f32.mxu1 %v2447_v35 }
  0xa2   : > { %731 = vmatprep.mubr.f32.mxu0 %v2475_v58 }
  0xa4   : > { %507 = vmatmul.mubr.f32.gmra.mrb[46].mxu1 %v2431_v54 }
  0xa5   : > { %732 = vmatmul.mubr.f32.gmra.mrb[46].mxu0 %v2461_v55  ;;  %511 = vmatprep.mubr.f32.mxu1 %v2454_v43 }
  0xa6   : > { %841 = vmatprep.mubr.f32.mxu0 %v2221_v60 }
  0xa8   : > { %512 = vmatmul.mubr.f32.gmra.mrb[48].mxu1 %v2440_v3 }
  0xa9   : > { %842 = vmatmul.mubr.f32.vlgmr.msra.gmra.mrb[0].mxu0 %v2191_v53  ;;  %516 = vmatprep.mubr.f32.mxu1 %v2461_v55  ;;  %v2498_v53 = vld [vmem:[%s1985_s16 + $0xc0] sm:$0xff] }
  0xaa   : > { %846 = vmatprep.mubr.f32.mxu0 %v2237_v0 }
  0xac   : > { %517 = vmatmul.mubr.f32.gmra.mrb[50].mxu1 %v2447_v35 }
  0xad   : > { %847 = vmatmul.mubr.f32.gmra.mrb[2].mxu0 %v2206_v57  ;;  %521 = vmatprep.mubr.f32.mxu1 %v2468_v8  ;;  %v2505_v57 = vld [vmem:[%s1985_s16 + $0xc8] sm:$0xff] }
  0xae   : > { %851 = vmatprep.mubr.f32.mxu0 %v2253_v4 }
  0xb0   : > { %522 = vmatmul.mubr.f32.gmra.mrb[52].mxu1 %v2454_v43 }
  0xb1   : > { %852 = vmatmul.mubr.f32.gmra.mrb[4].mxu0 %v2221_v60  ;;  %526 = vmatprep.mubr.f32.mxu1 %v2475_v58  ;;  %v313_v60 = vld [vmem:[%s2847_s1 + $0x310] sm:$0xff] }
  0xb2   : > { %856 = vmatprep.mubr.f32.mxu0 %v2269_v9  ;;  %v1635_v63 = vpack.c.bf16 %v314_v61, %v313_v60 }
  0xb4   : > { %527 = vmatmul.mubr.f32.gmra.mrb[54].mxu1 %v2461_v55 }
  0xb5   : > { %857 = vmatmul.mubr.f32.gmra.mrb[6].mxu0 %v2237_v0  ;;  %531 = vmatprep.mubr.f32.mxu1 %v2498_v53  ;;  %v316_v0 = vld [vmem:[%s2847_s1 + $0x328] sm:$0xff] }
  0xb6   : > { %861 = vmatprep.mubr.f32.mxu0 %v2285_v15  ;;  %v1639_v1 = vpack.c.bf16 %v316_v0, %v315_v19 }
  0xb8   : > { %532 = vmatmul.mubr.f32.gmra.mrb[56].mxu1 %v2468_v8 }
  0xb9   : > { %862 = vmatmul.mubr.f32.gmra.mrb[8].mxu0 %v2253_v4  ;;  %536 = vmatprep.mubr.f32.mxu1 %v2505_v57 }
  0xba   : > { %866 = vmatprep.mubr.f32.mxu0 %v2301_v18 }
  0xbc   : > { %537 = vmatmul.mubr.f32.gmra.mrb[58].mxu1 %v2475_v58 }
  0xbd   : > { %867 = vmatmul.mubr.f32.gmra.mrb[10].mxu0 %v2269_v9  ;;  %541 = vmatprep.mubr.f32.mxu1 %v2512_v59 }
  0xbe   : > { %871 = vmatprep.mubr.f32.mxu0 %v2317_v23 }
  0xc0   : > { %542 = vmatmul.mubr.f32.gmra.mrb[60].mxu1 %v2498_v53 }
  0xc1   : > { %872 = vmatmul.mubr.f32.gmra.mrb[12].mxu0 %v2285_v15  ;;  %546 = vmatprep.mubr.f32.mxu1 %v2519_v13 }
  0xc2   : > { %876 = vmatprep.mubr.f32.mxu0 %v2333_v27 }
  0xc4   : > { %547 = vmatmul.mubr.f32.gmra.mrb[62].mxu1 %v2505_v57 }
  0xc5   : > { %877 = vmatmul.mubr.f32.gmra.mrb[14].mxu0 %v2301_v18  ;;  %736 = vmatprep.mubr.f32.mxu1 %v2498_v53 }
  0xc6   : > { %881 = vmatprep.mubr.f32.mxu0 %v2349_v32 }
  0xc8   : > { %737 = vmatmul.mubr.f32.vlgmr.msra.gmra.mrb[48].mxu1 %v2468_v8 }
  0xc9   : > { %882 = vmatmul.mubr.f32.gmra.mrb[16].mxu0 %v2317_v23  ;;  %1634 = vmatpush3.bf16.msra.mxu1 %v2425_v52 }
  0xca   : > { %741 = vmatprep.mubr.f32.mxu1 %v2505_v57  ;;  %886 = vmatprep.mubr.f32.mxu0 %v2365_v36 }
  0xcb   : > { %1636 = vmatprep.subr.bf16.mxu1 %v1635_v63 }
  0xcc   : > { %742 = vmatmul.mubr.f32.gmra.mrb[50].mxu1 %v2475_v58 }
  0xcd   : > { %887 = vmatmul.mubr.f32.gmra.mrb[18].mxu0 %v2333_v27  ;;  %1638 = vmatpush3.bf16.msra.mxu1 %v1635_v63 }
  0xce   : > { %746 = vmatprep.mubr.f32.mxu1 %v2512_v59  ;;  %891 = vmatprep.mubr.f32.mxu0 %v2381_v40 }
  0xcf   : > { %1640 = vmatprep.subr.bf16.mxu1 %v1639_v1 }
  0xd0   : > { %747 = vmatmul.mubr.f32.gmra.mrb[52].mxu1 %v2498_v53 }
  0xd1   : > { %892 = vmatmul.mubr.f32.gmra.mrb[20].mxu0 %v2349_v32  ;;  %1642 = vmatpush3.bf16.msra.mxu1 %v1639_v1 }
  0xd2   : > { %751 = vmatprep.mubr.f32.mxu1 %v2519_v13  ;;  %896 = vmatprep.mubr.f32.mxu0 %v2397_v46 }
  0xd3   : > { %1644 = vmatprep.subr.bf16.mxu1 %v1643_v6 }
  0xd4   : > { %752 = vmatmul.mubr.f32.gmra.mrb[54].mxu1 %v2505_v57 }
  0xd5   : > { %897 = vmatmul.mubr.f32.gmra.mrb[22].mxu0 %v2365_v36  ;;  %1646 = vmatpush3.bf16.msra.mxu1 %v1643_v6 }
  0xd6   : > { %756 = vmatprep.mubr.f32.mxu1 %v2567_v10  ;;  %901 = vmatprep.mubr.f32.mxu0 %v2419_v51 }
  0xd7   : > { %1648 = vmatprep.subr.bf16.mxu1 %v1647_v12 }
  0xd8   : > { %757 = vmatmul.mubr.f32.gmra.mrb[56].mxu1 %v2512_v59 }
  0xd9   : > { %902 = vmatmul.mubr.f32.gmra.mrb[24].mxu0 %v2381_v40  ;;  %1650 = vmatpush3.bf16.msra.mxu1 %v1647_v12 }
  0xda   : > { %761 = vmatprep.mubr.f32.mxu1 %v2580_v42  ;;  %906 = vmatprep.mubr.f32.mxu0 %v2431_v54 }
  0xdb   : > { %1652 = vmatprep.subr.bf16.mxu1 %v1651_v17 }
  0xdc   : > { %762 = vmatmul.mubr.f32.gmra.mrb[58].mxu1 %v2519_v13 }
  0xdd   : > { %907 = vmatmul.mubr.f32.gmra.mrb[26].mxu0 %v2397_v46  ;;  %1654 = vmatpush3.bf16.msra.mxu1 %v1651_v17 }
  0xde   : > { %766 = vmatprep.mubr.f32.mxu1 %v2593_v22  ;;  %911 = vmatprep.mubr.f32.mxu0 %v2440_v3 }
  0xdf   : > { %1656 = vmatprep.subr.bf16.mxu1 %v1655_v50 }
  0xe0   : > { %767 = vmatmul.mubr.f32.gmra.mrb[60].mxu1 %v2567_v10 }
  0xe1   : > { %912 = vmatmul.mubr.f32.gmra.mrb[28].mxu0 %v2419_v51  ;;  %1658 = vmatpush3.bf16.msra.mxu1 %v1655_v50 }
  0xe2   : > { %771 = vmatprep.mubr.f32.mxu1 %v2606_v56  ;;  %916 = vmatprep.mubr.f32.mxu0 %v2447_v35 }
  0xe3   : > { %1660 = vmatprep.subr.bf16.mxu1 %v1659_v29 }
  0xe4   : > { %772 = vmatmul.mubr.f32.gmra.mrb[62].mxu1 %v2580_v42 }
  0xe5   : > { %917 = vmatmul.mubr.f32.gmra.mrb[30].mxu0 %v2431_v54  ;;  %1662 = vmatpush3.bf16.msra.mxu1 %v1659_v29 }
  0xe6   : > { %921 = vmatprep.mubr.f32.mxu0 %v2454_v43  ;;  %1439 = vmatprep.mubr.f32.mxu1 %v2253_v4 }
  0xe8   : > { %1440 = vmatmul.mubr.f32.vlgmr.msra.gmra.mrb[64].mxu1 %v2269_v9 }
  0xe9   : > { %922 = vmatmul.mubr.f32.gmra.mrb[32].mxu0 %v2440_v3  ;;  %1442 = vmatprep.mubr.f32.mxu1 %v2285_v15 }
  0xea   : > { %926 = vmatprep.mubr.f32.mxu0 %v2461_v55 }
  0xec   : > { %1443 = vmatmul.mubr.f32.gmra.mrb[66].mxu1 %v2301_v18 }
  0xed   : > { %927 = vmatmul.mubr.f32.gmra.mrb[34].mxu0 %v2447_v35  ;;  %1445 = vmatprep.mubr.f32.mxu1 %v2317_v23 }
  0xee   : > { %931 = vmatprep.mubr.f32.mxu0 %v2468_v8 }
  0xf0   : > { %1446 = vmatmul.mubr.f32.gmra.mrb[68].mxu1 %v2333_v27 }
  0xf1   : > { %932 = vmatmul.mubr.f32.gmra.mrb[36].mxu0 %v2454_v43  ;;  %1448 = vmatprep.mubr.f32.mxu1 %v2349_v32 }
  0xf2   : > { %936 = vmatprep.mubr.f32.mxu0 %v2475_v58 }
  0xf4   : > { %1449 = vmatmul.mubr.f32.gmra.mrb[70].mxu1 %v2365_v36 }
  0xf5   : > { %937 = vmatmul.mubr.f32.gmra.mrb[38].mxu0 %v2461_v55  ;;  %1451 = vmatprep.mubr.f32.mxu1 %v2381_v40 }
  0xf6   : > { %941 = vmatprep.mubr.f32.mxu0 %v2498_v53 }
  0xf8   : > { %1452 = vmatmul.mubr.f32.gmra.mrb[72].mxu1 %v2397_v46 }
  0xf9   : > { %942 = vmatmul.mubr.f32.gmra.mrb[40].mxu0 %v2468_v8  ;;  %1454 = vmatprep.mubr.f32.mxu1 %v2419_v51 }
  0xfa   : > { %946 = vmatprep.mubr.f32.mxu0 %v2505_v57 }
  0xfc   : > { %1455 = vmatmul.mubr.f32.gmra.mrb[74].mxu1 %v2431_v54 }
  0xfd   : > { %947 = vmatmul.mubr.f32.gmra.mrb[42].mxu0 %v2475_v58  ;;  %1457 = vmatprep.mubr.f32.mxu1 %v2440_v3 }
  0xfe   : > { %951 = vmatprep.mubr.f32.mxu0 %v2512_v59 }
 0x100   : > { %1458 = vmatmul.mubr.f32.gmra.mrb[76].mxu1 %v2447_v35 }
 0x101   : > { %952 = vmatmul.mubr.f32.gmra.mrb[44].mxu0 %v2498_v53  ;;  %1460 = vmatprep.mubr.f32.mxu1 %v2454_v43 }
 0x102   : > { %956 = vmatprep.mubr.f32.mxu0 %v2519_v13 }
 0x104   : > { %1461 = vmatmul.mubr.f32.gmra.mrb[78].mxu1 %v2461_v55 }
 0x105   : > { %957 = vmatmul.mubr.f32.gmra.mrb[46].mxu0 %v2505_v57  ;;  %1463 = vmatprep.mubr.f32.mxu1 %v2468_v8 }
 0x106   : > { %961 = vmatprep.mubr.f32.mxu0 %v2567_v10 }
 0x108   : > { %1464 = vmatmul.mubr.f32.gmra.mrb[80].mxu1 %v2475_v58 }
 0x109   : > { %962 = vmatmul.mubr.f32.gmra.mrb[48].mxu0 %v2512_v59  ;;  %1466 = vmatprep.mubr.f32.mxu1 %v2498_v53 }
 0x10a   : > { %966 = vmatprep.mubr.f32.mxu0 %v2580_v42 }
 0x10c   : > { %1467 = vmatmul.mubr.f32.gmra.mrb[82].mxu1 %v2505_v57 }
 0x10d   : > { %967 = vmatmul.mubr.f32.gmra.mrb[50].mxu0 %v2519_v13  ;;  %1469 = vmatprep.mubr.f32.mxu1 %v2512_v59 }
 0x10e   : > { %971 = vmatprep.mubr.f32.mxu0 %v2593_v22 }
 0x110   : > { %1470 = vmatmul.mubr.f32.gmra.mrb[84].mxu1 %v2519_v13 }
 0x111   : > { %972 = vmatmul.mubr.f32.gmra.mrb[52].mxu0 %v2567_v10  ;;  %1472 = vmatprep.mubr.f32.mxu1 %v2567_v10 }
 0x112   : > { %976 = vmatprep.mubr.f32.mxu0 %v2606_v56 }
 0x114   : > { %1473 = vmatmul.mubr.f32.gmra.mrb[86].mxu1 %v2580_v42 }
 0x115   : > { %977 = vmatmul.mubr.f32.gmra.mrb[54].mxu0 %v2580_v42  ;;  %1475 = vmatprep.mubr.f32.mxu1 %v2593_v22 }
 0x116   : > { %981 = vmatprep.mubr.f32.mxu0 %v1842_v11 }
 0x118   : > { %1476 = vmatmul.mubr.f32.gmra.mrb[88].mxu1 %v2606_v56 }
 0x119   : > { %982 = vmatmul.mubr.f32.gmra.mrb[56].mxu0 %v2593_v22  ;;  %1478 = vmatprep.mubr.f32.mxu1 %v1842_v11 }
 0x11a   : > { %986 = vmatprep.mubr.f32.mxu0 %v1842_v11 }
 0x11b   : > { %v393_v4 = vpop.f32.mrb[0].mxu1 }
 0x11c   : > { %1479 = vmatmul.mubr.f32.gmra.mrb[90].mxu1 %v1842_v11  ;;  %v395_v9 = vpop.f32.mrb[1].mxu1 }
 0x11d   : > { %987 = vmatmul.mubr.f32.gmra.mrb[58].mxu0 %v2606_v56  ;;  %1481 = vmatprep.mubr.f32.mxu1 %v1842_v11 }
 0x11e   : > { %991 = vmatprep.mubr.f32.mxu0 %v1842_v11 }
 0x11f   : > { %v398_v15 = vpop.f32.mrb[2].mxu1 }
 0x120   : > { %1482 = vmatmul.mubr.f32.gmra.mrb[92].mxu1 %v1842_v11  ;;  %v400_v18 = vpop.f32.mrb[3].mxu1 }
 0x121   : > { %992 = vmatmul.mubr.f32.gmra.mrb[60].mxu0 %v1842_v11  ;;  %1484 = vmatprep.mubr.f32.mxu1 %v1842_v11 }
 0x122   : > { %996 = vmatprep.mubr.f32.mxu0 %v1842_v11 }
 0x123   : > { %v403_v23 = vpop.f32.mrb[4].mxu1 }
 0x124   : > { %1485 = vmatmul.mubr.f32.gmra.mrb[94].mxu1 %v1842_v11  ;;  %v405_v27 = vpop.f32.mrb[5].mxu1 }
 0x125   : > { %997 = vmatmul.mubr.f32.gmra.mrb[62].mxu0 %v1842_v11 }
 0x127   : > { %v408_v30 = vpop.f32.mrb[6].mxu1 }
 0x128   : > { %v410_v32 = vpop.f32.mrb[7].mxu1 }
 0x12b   : > { %v413_v62 = vpop.f32.mrb[8].mxu1 }
 0x12c   : > { %v415_v33 = vpop.f32.mrb[9].mxu1 }
 0x12f   : > { %v418_v34 = vpop.f32.mrb[10].mxu1 }
 0x130   : > { %v420_v36 = vpop.f32.mrb[11].mxu1 }
 0x133   : > { %v423_v5 = vpop.f32.mrb[12].mxu1 }
 0x134   : > { %v425_v38 = vpop.f32.mrb[13].mxu1 }
 0x137   : > { %v428_v39 = vpop.f32.mrb[14].mxu1 }
 0x138   : > { %v430_v40 = vpop.f32.mrb[15].mxu1 }
 0x13b   : > { %v433_v14 = vpop.f32.mrb[16].mxu1 }
 0x13c   : > { %v435_v41 = vpop.f32.mrb[17].mxu1 }
 0x13f   : > { %v438_v45 = vpop.f32.mrb[18].mxu1 }
 0x140   : > { %v440_v46 = vpop.f32.mrb[19].mxu1 }
 0x143   : > { %v2678_v21 = vpop.f32.mrb[20].mxu1 }
 0x144   : > { %v445_v47 = vpop.f32.mrb[21].mxu1 }
 0x147   : > { %v2680_v48 = vpop.f32.mrb[22].mxu1 }
 0x148   : > { %v450_v11 = vpop.f32.mrb[23].mxu1 }
 0x14b   : > { %v2682_v49 = vpop.f32.mrb[24].mxu1 }
 0x14c   : > { %v455_v28 = vpop.f32.mrb[25].mxu1 }
 0x14f   : > { %v2684_v51 = vpop.f32.mrb[26].mxu1 }
 0x150   : > { %v460_v52 = vpop.f32.mrb[27].mxu1 }
 0x153   : > { %v2686_v54 = vpop.f32.mrb[28].mxu1 }
 0x154   : > { %v465_v3 = vpop.f32.mrb[29].mxu1 }
 0x157   : > { %v2688_v35 = vpop.f32.mrb[30].mxu1 }
 0x158   : > { %v470_v43 = vpop.f32.mrb[31].mxu1 }
 0x15b   : > { %v2690_v55 = vpop.f32.mrb[32].mxu1 }
 0x15c   : > { %v475_v8 = vpop.f32.mrb[33].mxu1 }
 0x15f   : > { %v2692_v58 = vpop.f32.mrb[34].mxu1 }
 0x160   : > { %v480_v53 = vpop.f32.mrb[35].mxu1 }
 0x163   : > { %v2694_v57 = vpop.f32.mrb[36].mxu1 }
 0x164   : > { %v485_v59 = vpop.f32.mrb[37].mxu1 }
 0x167   : > { %v2696_v13 = vpop.f32.mrb[38].mxu1 }
 0x168   : > { %v490_v60 = vpop.f32.mrb[39].mxu1 }
 0x16b   : > { %v2698_v61 = vpop.f32.mrb[40].mxu1 }
 0x16c   : > { %v495_v63 = vpop.f32.mrb[41].mxu1 }
 0x16f   : > { %v2700_v19 = vpop.f32.mrb[42].mxu1 }
 0x170   : > { %v500_v0 = vpop.f32.mrb[43].mxu1 }
 0x173   : > { %v2702_v1 = vpop.f32.mrb[44].mxu1 }
 0x174   : > { %v505_v2 = vpop.f32.mrb[45].mxu1 }
 0x177   : > { %v2704_v25 = vpop.f32.mrb[46].mxu1 }
 0x178   : > { %v510_v6 = vpop.f32.mrb[47].mxu1 }
 0x17c   : > { %v843_v7 = vpop.f32.mrb[0].mxu0 }
 0x17d   : > { %v2706_v31 = vadd.f32 %v843_v7, %v393_v4  ;;  %v845_v10 = vpop.f32.mrb[1].mxu0 }
 0x180   : > { %v848_v12 = vpop.f32.mrb[2].mxu0 }
 0x181   : > { %v2708_v37 = vadd.f32 %v848_v12, %v398_v15  ;;  %v850_v16 = vpop.f32.mrb[3].mxu0 }
 0x184   : > { %v853_v42 = vpop.f32.mrb[4].mxu0 }
 0x185   : > { %v2710_v17 = vadd.f32 %v853_v42, %v403_v23  ;;  %v855_v44 = vpop.f32.mrb[5].mxu0 }
 0x188   : > { %v858_v20 = vpop.f32.mrb[6].mxu0 }
 0x189   : > { %v2712_v22 = vadd.f32 %v858_v20, %v408_v30  ;;  %v860_v50 = vpop.f32.mrb[7].mxu0 }
 0x18c   : > { %v863_v24 = vpop.f32.mrb[8].mxu0 }
 0x18d   : > { %v2714_v26 = vadd.f32 %v863_v24, %v413_v62  ;;  %v865_v56 = vpop.f32.mrb[9].mxu0 }
 0x190   : > { %v868_v29 = vpop.f32.mrb[10].mxu0 }
 0x191   : > { %v2716_v4 = vadd.f32 %v868_v29, %v418_v34  ;;  %v870_v9 = vpop.f32.mrb[11].mxu0 }
 0x194   : > { %v873_v18 = vpop.f32.mrb[12].mxu0 }
 0x195   : > { %v2718_v15 = vadd.f32 %v873_v18, %v423_v5  ;;  %v875_v27 = vpop.f32.mrb[13].mxu0 }
 0x198   : > { %v878_v32 = vpop.f32.mrb[14].mxu0 }
 0x199   : > { %v2720_v23 = vadd.f32 %v878_v32, %v428_v39  ;;  %v880_v33 = vpop.f32.mrb[15].mxu0 }
 0x19b   : > { %v2722_v36 = vpop.f32.mrb[48].mxu1 }
 0x19c   : > { %v883_v30 = vpop.f32.mrb[16].mxu0  ;;  %v740_v38 = vpop.f32.mrb[49].mxu1 }
 0x19d   : > { %v2724_v40 = vadd.f32 %v883_v30, %v433_v14  ;;  %v885_v62 = vpop.f32.mrb[17].mxu0 }
 0x19f   : > { %v2726_v41 = vpop.f32.mrb[50].mxu1 }
 0x1a0   : > { %v888_v34 = vpop.f32.mrb[18].mxu0  ;;  %v745_v46 = vpop.f32.mrb[51].mxu1 }
 0x1a1   : > { %v2728_v47 = vadd.f32 %v888_v34, %v438_v45  ;;  %v890_v5 = vpop.f32.mrb[19].mxu0 }
 0x1a3   : > { %v2730_v11 = vpop.f32.mrb[52].mxu1 }
 0x1a4   : > { %v893_v28 = vpop.f32.mrb[20].mxu0  ;;  %v750_v39 = vpop.f32.mrb[53].mxu1 }
 0x1a5   : > { %v2733_v52 = vadd.f32 %v893_v28, %v2678_v21  ;;  %v895_v3 = vpop.f32.mrb[21].mxu0 }
 0x1a7   : > { %v2735_v43 = vpop.f32.mrb[54].mxu1 }
 0x1a8   : > { %v898_v14 = vpop.f32.mrb[22].mxu0  ;;  %v755_v8 = vpop.f32.mrb[55].mxu1 }
 0x1a9   : > { %v2738_v53 = vadd.f32 %v898_v14, %v2680_v48  ;;  %v900_v59 = vpop.f32.mrb[23].mxu0 }
 0x1ab   : > { %v2740_v60 = vpop.f32.mrb[56].mxu1 }
 0x1ac   : > { %v903_v45 = vpop.f32.mrb[24].mxu0  ;;  %v760_v63 = vpop.f32.mrb[57].mxu1 }
 0x1ad   : > { %v2743_v0 = vadd.f32 %v903_v45, %v2682_v49  ;;  %v905_v2 = vpop.f32.mrb[25].mxu0 }
 0x1af   : > { %v2745_v21 = vpop.f32.mrb[58].mxu1 }
 0x1b0   : > { %v908_v6 = vpop.f32.mrb[26].mxu0  ;;  %v765_v7 = vpop.f32.mrb[59].mxu1 }
 0x1b1   : > { %v2748_v10 = vadd.f32 %v908_v6, %v2684_v51  ;;  %v910_v12 = vpop.f32.mrb[27].mxu0 }
 0x1b3   : > { %v2750_v48 = vpop.f32.mrb[60].mxu1 }
 0x1b4   : > { %v913_v16 = vpop.f32.mrb[28].mxu0  ;;  %v770_v42 = vpop.f32.mrb[61].mxu1 }
 0x1b5   : > { %v2753_v44 = vadd.f32 %v913_v16, %v2686_v54  ;;  %v915_v20 = vpop.f32.mrb[29].mxu0 }
 0x1b7   : > { %v2755_v49 = vpop.f32.mrb[62].mxu1 }
 0x1b8   : > { %v918_v50 = vpop.f32.mrb[30].mxu0  ;;  %v775_v24 = vpop.f32.mrb[63].mxu1 }
 0x1b9   : > { %v2758_v56 = vadd.f32 %v918_v50, %v2688_v35  ;;  %v920_v29 = vpop.f32.mrb[31].mxu0 }
 0x1bb   : > { %v1441_v51 = vpop.f32.mrb[64].mxu1 }
 0x1bc   : > { %v923_v54 = vpop.f32.mrb[32].mxu0  ;;  %v1074_v9 = vadd.f32 %v2708_v37, %v1441_v51  ;;  %v1068_v18 = vpop.f32.mrb[65].mxu1 }
 0x1bd   : > { %v2769_v27 = vadd.f32 %v923_v54, %v2690_v55  ;;  %v925_v35 = vpop.f32.mrb[33].mxu0  ;;  %v1069_v32 = vadd.f32 %v2706_v31, %v1068_v18 }
 0x1be   : > { %1228 = vst [vmem:[%s2765_s18 + $0x8] sm:$0xff] %v1074_v9 }
 0x1bf   : > { %1227 = vst [vmem:[%s2765_s18] sm:$0xff] %v1069_v32  ;;  %v1444_v33 = vpop.f32.mrb[66].mxu1 }
 0x1c0   : > { %v928_v30 = vpop.f32.mrb[34].mxu0  ;;  %v1084_v38 = vadd.f32 %v2712_v22, %v1444_v33  ;;  %v1078_v62 = vpop.f32.mrb[67].mxu1 }
 0x1c1   : > { %v1712_v34 = vadd.f32 %v928_v30, %v2692_v58  ;;  %v930_v46 = vpop.f32.mrb[35].mxu0  ;;  %v1079_v37 = vadd.f32 %v2710_v17, %v1078_v62 }
 0x1c2   : > { %1230 = vst [vmem:[%s2765_s18 + $0x18] sm:$0xff] %v1084_v38 }
 0x1c3   : > { %1229 = vst [vmem:[%s2765_s18 + $0x10] sm:$0xff] %v1079_v37  ;;  %v1447_v55 = vpop.f32.mrb[68].mxu1 }
 0x1c4   : > { %v933_v5 = vpop.f32.mrb[36].mxu0  ;;  %v1094_v31 = vadd.f32 %v2716_v4, %v1447_v55  ;;  %v1088_v28 = vpop.f32.mrb[69].mxu1 }
 0x1c5   : > { %v2781_v39 = vadd.f32 %v933_v5, %v2694_v57  ;;  %v935_v3 = vpop.f32.mrb[37].mxu0  ;;  %v1089_v22 = vadd.f32 %v2714_v26, %v1088_v28 }
 0x1c6   : > { %1232 = vst [vmem:[%s2765_s18 + $0x28] sm:$0xff] %v1094_v31 }
 0x1c7   : > { %1231 = vst [vmem:[%s2765_s18 + $0x20] sm:$0xff] %v1089_v22  ;;  %v1450_v58 = vpop.f32.mrb[70].mxu1 }
 0x1c8   : > { %v938_v17 = vpop.f32.mrb[38].mxu0  ;;  %v1104_v14 = vadd.f32 %v2720_v23, %v1450_v58  ;;  %v1098_v8 = vpop.f32.mrb[71].mxu1 }
 0x1c9   : > { %v1714_v59 = vadd.f32 %v938_v17, %v2696_v13  ;;  %v940_v45 = vpop.f32.mrb[39].mxu0  ;;  %v1099_v4 = vadd.f32 %v2718_v15, %v1098_v8 }
 0x1ca   : > { %1234 = vst [vmem:[%s2765_s18 + $0x38] sm:$0xff] %v1104_v14 }
 0x1cb   : > { %1233 = vst [vmem:[%s2765_s18 + $0x30] sm:$0xff] %v1099_v4  ;;  %v1453_v57 = vpop.f32.mrb[72].mxu1 }
 0x1cc   : > { %v943_v63 = vpop.f32.mrb[40].mxu0  ;;  %v1114_v26 = vadd.f32 %v2728_v47, %v1453_v57  ;;  %v1108_v2 = vpop.f32.mrb[73].mxu1 }
 0x1cd   : > { %v1715_v6 = vadd.f32 %v943_v63, %v2698_v61  ;;  %v945_v7 = vpop.f32.mrb[41].mxu0  ;;  %v1109_v23 = vadd.f32 %v2724_v40, %v1108_v2 }
 0x1ce   : > { %1236 = vst [vmem:[%s2765_s18 + $0x48] sm:$0xff] %v1114_v26 }
 0x1cf   : > { %1235 = vst [vmem:[%s2765_s18 + $0x40] sm:$0xff] %v1109_v23  ;;  %v1456_v13 = vpop.f32.mrb[74].mxu1 }
 0x1d0   : > { %v948_v12 = vpop.f32.mrb[42].mxu0  ;;  %v1124_v15 = vadd.f32 %v2738_v53, %v1456_v13  ;;  %v1118_v16 = vpop.f32.mrb[75].mxu1 }
 0x1d1   : > { %v1716_v42 = vadd.f32 %v948_v12, %v2700_v19  ;;  %v950_v20 = vpop.f32.mrb[43].mxu0  ;;  %v1119_v47 = vadd.f32 %v2733_v52, %v1118_v16 }
 0x1d2   : > { %1238 = vst [vmem:[%s2765_s18 + $0x58] sm:$0xff] %v1124_v15 }
 0x1d3   : > { %1237 = vst [vmem:[%s2765_s18 + $0x50] sm:$0xff] %v1119_v47  ;;  %v1459_v61 = vpop.f32.mrb[76].mxu1 }
 0x1d4   : > { %v953_v50 = vpop.f32.mrb[44].mxu0  ;;  %v1134_v40 = vadd.f32 %v2748_v10, %v1459_v61  ;;  %v1128_v24 = vpop.f32.mrb[77].mxu1 }
 0x1d5   : > { %v1717_v29 = vadd.f32 %v953_v50, %v2702_v1  ;;  %v955_v51 = vpop.f32.mrb[45].mxu0  ;;  %v1129_v53 = vadd.f32 %v2743_v0, %v1128_v24 }
 0x1d6   : > { %1240 = vst [vmem:[%s2765_s18 + $0x68] sm:$0xff] %v1134_v40 }
 0x1d7   : > { %1239 = vst [vmem:[%s2765_s18 + $0x60] sm:$0xff] %v1129_v53  ;;  %v1462_v19 = vpop.f32.mrb[78].mxu1 }
 0x1d8   : > { %v958_v54 = vpop.f32.mrb[46].mxu0  ;;  %v1144_v52 = vadd.f32 %v2758_v56, %v1462_v19  ;;  %v1138_v9 = vpop.f32.mrb[79].mxu1 }
 0x1d9   : > { %v1718_v18 = vadd.f32 %v958_v54, %v2704_v25  ;;  %v960_v35 = vpop.f32.mrb[47].mxu0  ;;  %v1139_v10 = vadd.f32 %v2753_v44, %v1138_v9 }
 0x1da   : > { %1242 = vst [vmem:[%s2765_s18 + $0x78] sm:$0xff] %v1144_v52 }
 0x1db   : > { %1241 = vst [vmem:[%s2765_s18 + $0x70] sm:$0xff] %v1139_v10  ;;  %v1465_v1 = vpop.f32.mrb[80].mxu1 }
 0x1dc   : > { %v963_v32 = vpop.f32.mrb[48].mxu0  ;;  %v1154_v0 = vadd.f32 %v1712_v34, %v1465_v1  ;;  %v1148_v33 = vpop.f32.mrb[81].mxu1 }
 0x1dd   : > { %v1719_v30 = vadd.f32 %v963_v32, %v2722_v36  ;;  %v965_v38 = vpop.f32.mrb[49].mxu0  ;;  %v1149_v62 = vadd.f32 %v2769_v27, %v1148_v33 }
 0x1de   : > { %1244 = vst [vmem:[%s2765_s18 + $0x88] sm:$0xff] %v1154_v0 }
 0x1df   : > { %1243 = vst [vmem:[%s2765_s18 + $0x80] sm:$0xff] %v1149_v62  ;;  %v1468_v56 = vpop.f32.mrb[82].mxu1 }
 0x1e0   : > { %v968_v25 = vpop.f32.mrb[50].mxu0  ;;  %v1164_v44 = vadd.f32 %v1714_v59, %v1468_v56  ;;  %v1158_v46 = vpop.f32.mrb[83].mxu1 }
 0x1e1   : > { %v1720_v37 = vadd.f32 %v968_v25, %v2726_v41  ;;  %v970_v55 = vpop.f32.mrb[51].mxu0  ;;  %v1159_v5 = vadd.f32 %v2781_v39, %v1158_v46 }
 0x1e2   : > { %1246 = vst [vmem:[%s2765_s18 + $0x98] sm:$0xff] %v1164_v44 }
 0x1e3   : > { %1245 = vst [vmem:[%s2765_s18 + $0x90] sm:$0xff] %v1159_v5  ;;  %v1471_v34 = vpop.f32.mrb[84].mxu1 }
 0x1e4   : > { %v973_v36 = vpop.f32.mrb[52].mxu0  ;;  %v1174_v27 = vadd.f32 %v1716_v42, %v1471_v34  ;;  %v1168_v31 = vpop.f32.mrb[85].mxu1 }
 0x1e5   : > { %v1721_v28 = vadd.f32 %v973_v36, %v2730_v11  ;;  %v975_v3 = vpop.f32.mrb[53].mxu0  ;;  %v1169_v22 = vadd.f32 %v1715_v6, %v1168_v31 }
 0x1e6   : > { %1248 = vst [vmem:[%s2765_s18 + $0xa8] sm:$0xff] %v1174_v27 }
 0x1e7   : > { %1247 = vst [vmem:[%s2765_s18 + $0xa0] sm:$0xff] %v1169_v22  ;;  %v1474_v58 = vpop.f32.mrb[86].mxu1 }
 0x1e8   : > { %v978_v41 = vpop.f32.mrb[54].mxu0  ;;  %v1184_v17 = vadd.f32 %v1718_v18, %v1474_v58  ;;  %v1178_v39 = vpop.f32.mrb[87].mxu1 }
 0x1e9   : > { %v1722_v14 = vadd.f32 %v978_v41, %v2735_v43  ;;  %v980_v8 = vpop.f32.mrb[55].mxu0  ;;  %v1179_v59 = vadd.f32 %v1717_v29, %v1178_v39 }
 0x1ea   : > { %1250 = vst [vmem:[%s2765_s18 + $0xb8] sm:$0xff] %v1184_v17 }
 0x1eb   : > { %1249 = vst [vmem:[%s2765_s18 + $0xb0] sm:$0xff] %v1179_v59  ;;  %v1477_v45 = vpop.f32.mrb[88].mxu1 }
 0x1ec   : > { %v983_v4 = vpop.f32.mrb[56].mxu0  ;;  %v1194_v11 = vadd.f32 %v1720_v37, %v1477_v45  ;;  %v1188_v57 = vpop.f32.mrb[89].mxu1 }
 0x1ed   : > { %v1723_v63 = vadd.f32 %v983_v4, %v2740_v60  ;;  %v985_v26 = vpop.f32.mrb[57].mxu0  ;;  %v1189_v2 = vadd.f32 %v1719_v30, %v1188_v57 }
 0x1ee   : > { %1252 = vst [vmem:[%s2765_s18 + $0xc8] sm:$0xff] %v1194_v11 }
 0x1ef   : > { %1251 = vst [vmem:[%s2765_s18 + $0xc0] sm:$0xff] %v1189_v2  ;;  %v1480_v6 = vpop.f32.mrb[90].mxu1 }
 0x1f0   : > { %v988_v7 = vpop.f32.mrb[58].mxu0  ;;  %v1204_v43 = vadd.f32 %v1722_v14, %v1480_v6  ;;  %v1198_v23 = vpop.f32.mrb[91].mxu1 }
 0x1f1   : > { %v1724_v13 = vadd.f32 %v988_v7, %v2745_v21  ;;  %v990_v12 = vpop.f32.mrb[59].mxu0  ;;  %v1199_v15 = vadd.f32 %v1721_v28, %v1198_v23 }
 0x1f2   : > { %1254 = vst [vmem:[%s2765_s18 + $0xd8] sm:$0xff] %v1204_v43 }
 0x1f3   : > { %1253 = vst [vmem:[%s2765_s18 + $0xd0] sm:$0xff] %v1199_v15  ;;  %v1483_v16 = vpop.f32.mrb[92].mxu1 }
 0x1f4   : > { %v993_v42 = vpop.f32.mrb[60].mxu0  ;;  %v1214_v60 = vadd.f32 %v1724_v13, %v1483_v16  ;;  %v1208_v20 = vpop.f32.mrb[93].mxu1 }
 0x1f5   : > { %v1725_v47 = vadd.f32 %v993_v42, %v2750_v48  ;;  %v995_v61 = vpop.f32.mrb[61].mxu0  ;;  %v1209_v50 = vadd.f32 %v1723_v63, %v1208_v20 }
 0x1f6   : > { %1256 = vst [vmem:[%s2765_s18 + $0xe8] sm:$0xff] %v1214_v60 }
 0x1f7   : > { %1255 = vst [vmem:[%s2765_s18 + $0xe0] sm:$0xff] %v1209_v50  ;;  %v1486_v40 = vpop.f32.mrb[94].mxu1 }
 0x1f8   : > { %v998_v24 = vpop.f32.mrb[62].mxu0  ;;  %v1218_v29 = vpop.f32.mrb[95].mxu1 }
 0x1f9   : > { %v1726_v21 = vadd.f32 %v998_v24, %v2755_v49  ;;  %v1000_v51 = vpop.f32.mrb[63].mxu0  ;;  %v1219_v53 = vadd.f32 %v1725_v47, %v1218_v29 }
 0x1fb   : > { %v1224_v19 = vadd.f32 %v1726_v21, %v1486_v40  ;;  %1257 = vst [vmem:[%s2765_s18 + $0xf0] sm:$0xff] %v1219_v53 }
 0x1fd   : > { %1258 = vst [vmem:[%s2765_s18 + $0xf8] sm:$0xff] %v1224_v19 }
 0x1fe PF: > { %s12_s11 = sadd.s32 1, %s1839_s11   ;;  %s2849_s9 = smov %s1835_s10 }
 0x1ff   : > { %p9_p5 = scmp.ge.s32.totalorder %s12_s11, 4   ;;  %s2850_s10 = smov %s2852_s12 }
 0x201   :  { %11 = sbr.rel (!%p9_p5) target bundleno = 2 (0x2), region = 58 }

</bundles_post_ra>
